<compile_context>
chip_gen: v5e
topology: v5e:2x2
jax: 0.10.0
libtpu: 0.0.40
codegen_flags: <defaults>
</compile_context>

<pallas_src>
import functools

import jax
import jax.numpy as jnp
from jax.experimental import pallas as pl
from jax.experimental.pallas import tpu as pltpu

COMPUTE_DTYPE = jnp.bfloat16     # MXU input / activation-in-HBM dtype (f32 accumulate)
MAX_ROW_TILE = 1024              # max packed rows per pipelined grid step
PACK_FACTORS = (4, 2, 1)         # row-packing factors tried for lane-dense conv outputs
# (name, kernel, stride, out_channels) for the three conv layers
CONV_CFG = (("conv1", 8, 4, 32), ("conv2", 4, 2, 64), ("conv3", 3, 1, 64))


# ----------------------------------------------------------------------------
# Small helpers
# ----------------------------------------------------------------------------
def _round_up(x, m):
    return -(-x // m) * m


def _row_tiling(m, max_tile=MAX_ROW_TILE):
    """Balanced row tiling: (tile_rows, num_tiles).

    tile_rows is a multiple of 8 (sublane) unless a single full block is used;
    tiles are balanced (no tiny ragged remainder) and there are >=2 grid steps
    whenever possible so the "parallel" M axis can shard across both v7x TCs.
    """
    if m <= 8:
        return m, 1
    ntiles = max(pl.cdiv(m, max_tile), 2)
    tile = _round_up(pl.cdiv(m, ntiles), 8)
    return tile, pl.cdiv(m, tile)


def _block_replicate(w, g):
    """Block-diagonal replication of w (K, N) -> (g*K, g*N) with w on the diagonal."""
    if g == 1:
        return w
    k, n = w.shape
    eye = jnp.eye(g, dtype=w.dtype)
    return (eye[:, None, :, None] * w[None, :, None, :]).reshape(g * k, g * n)


def _block_diag2(a, b):
    ra, ca = a.shape
    rb, cb = b.shape
    z = jnp.zeros((ra + rb, ca + cb), dtype=a.dtype)
    return z.at[:ra, :ca].set(a).at[ra:, ca:].set(b)


def _patch_feature_perm(kh, kw, cin):
    """Feature ordering used by lax.conv_general_dilated_patches (NHWC layout).

    Returns perm with perm[p] = (i_p*kw + j_p)*cin + c_p, i.e. the flat (kh, kw, c)
    source offset of patch feature p — robust to any internal ordering convention.
    """
    probe = jnp.arange(kh * kw * cin, dtype=jnp.float32).reshape(1, kh, kw, cin)
    pat = jax.lax.conv_general_dilated_patches(
        probe, (kh, kw), (1, 1), "VALID",
        dimension_numbers=("NHWC", "HWIO", "NHWC"))
    return jnp.round(pat.reshape(-1)).astype(jnp.int32)


def _nchw_rows_to_nhwc(w, channels, oh, ow, feature_size):
    """Permute the first feature_size rows of w from torch NCHW-flatten order to
    NHWC-flatten order (so the heads can consume NHWC-flattened features)."""
    wf = w[:feature_size].reshape(channels, oh, ow, -1)
    wf = jnp.transpose(wf, (1, 2, 0, 3)).reshape(feature_size, -1)
    return jnp.concatenate([wf, w[feature_size:]], axis=0)


# ----------------------------------------------------------------------------
# Pallas kernels
# ----------------------------------------------------------------------------
def _matmul_bias_kernel(x_ref, w_ref, b_ref, o_ref, *, relu):
    x = x_ref[...]
    w = w_ref[...]
    if x.dtype != w.dtype:                       # safety; inputs are pre-cast to bf16
        x = x.astype(w.dtype)
    y = jnp.dot(x, w, preferred_element_type=jnp.float32)
    y = y + b_ref[...]                           # bias & accumulation stay f32
    if relu:
        y = jnp.maximum(y, 0.0)
    o_ref[...] = y.astype(o_ref.dtype)


def pallas_linear(x, w, b, *, relu, out_dtype=None):
    """y = (relu)(x @ w + b); x:(M,K) bf16, w:(K,N) bf16, b:(1,N) f32.

    Tiled over M (grid axis "parallel") so Pallas double-buffers the row tiles.
    """
    m, k = x.shape
    kw_, n = w.shape
    assert kw_ == k and b.shape == (1, n)
    out_dtype = jnp.dtype(out_dtype or x.dtype)
    tm, ntiles = _row_tiling(m)
    cost = pl.CostEstimate(
        flops=2 * m * k * n + 2 * m * n,
        transcendentals=0,
        bytes_accessed=(x.size * x.dtype.itemsize + w.size * w.dtype.itemsize
                        + b.size * b.dtype.itemsize + m * n * out_dtype.itemsize),
    )
    return pl.pallas_call(
        functools.partial(_matmul_bias_kernel, relu=relu),
        out_shape=jax.ShapeDtypeStruct((m, n), out_dtype),
        grid=(ntiles,),
        in_specs=[
            pl.BlockSpec((tm, k), lambda i: (i, 0)),
            pl.BlockSpec((k, n), lambda i: (0, 0)),
            pl.BlockSpec((1, n), lambda i: (0, 0)),
        ],
        out_specs=pl.BlockSpec((tm, n), lambda i: (i, 0)),
        compiler_params=pltpu.CompilerParams(dimension_semantics=("parallel",)),
        cost_estimate=cost,
    )(x, w, b)


def _twin_qhead_kernel(x_ref, w1_ref, b1_ref, w2_ref, b2_ref, w3_ref, b3_ref, o_ref):
    w1 = w1_ref[...]
    cdt = w1.dtype
    x = x_ref[...]
    if x.dtype != cdt:
        x = x.astype(cdt)
    h = jnp.dot(x, w1, preferred_element_type=jnp.float32) + b1_ref[...]
    h = jnp.maximum(h, 0.0).astype(cdt)
    h = jnp.dot(h, w2_ref[...], preferred_element_type=jnp.float32) + b2_ref[...]
    h = jnp.maximum(h, 0.0).astype(cdt)
    q = jnp.dot(h, w3_ref[...], preferred_element_type=jnp.float32) + b3_ref[...]
    o_ref[...] = q.astype(o_ref.dtype)


def pallas_twin_qhead(x, w1, b1, w2, b2, w3, b3):
    """Both Q heads fused & lane-packed in one pallas_call, tiled over rows.

    w1 = [w1_q1 | w1_q2] (K, 2H), w2 = blockdiag(w2_q1, w2_q2) (2H, 2H),
    w3 = blockdiag(w3_q1, w3_q2) (2H, 2): a single fc1->relu->fc2->relu->out
    chain evaluates both heads; output is a dense (M, 2) slab (q1, q2 columns).
    """
    m, k = x.shape
    h2 = w1.shape[1]
    tm, ntiles = _row_tiling(m)
    return pl.pallas_call(
        _twin_qhead_kernel,
        out_shape=jax.ShapeDtypeStruct((m, 2), jnp.float32),
        grid=(ntiles,),
        in_specs=[
            pl.BlockSpec((tm, k), lambda i: (i, 0)),
            pl.BlockSpec((k, h2), lambda i: (0, 0)),
            pl.BlockSpec((1, h2), lambda i: (0, 0)),
            pl.BlockSpec((h2, h2), lambda i: (0, 0)),
            pl.BlockSpec((1, h2), lambda i: (0, 0)),
            pl.BlockSpec((h2, 2), lambda i: (0, 0)),
            pl.BlockSpec((1, 2), lambda i: (0, 0)),
        ],
        out_specs=pl.BlockSpec((tm, 2), lambda i: (i, 0)),
        compiler_params=pltpu.CompilerParams(dimension_semantics=("parallel",)),
    )(x, w1, b1, w2, b2, w3, b3)


# ----------------------------------------------------------------------------
# Conv2d (valid padding, stride) = fused XLA patch extraction + Pallas matmul
# ----------------------------------------------------------------------------
def conv2d_relu_nhwc(x, wpack, bpack, kh, kw, stride):
    """x: (N,H,W,Cin) NHWC bf16; wpack/bpack: {g: packed bf16 weight / f32 bias}.

    Output rows are lane-packed: g consecutive (row, Cout) outputs become one
    (g*Cout)-wide row via the block-diagonal packed weight, so the Pallas store
    is 128-lane dense.  Row-major reshapes on HBM arrays are free views.
    """
    n, h, w, c = x.shape
    oh = (h - kh) // stride + 1
    ow = (w - kw) // stride + 1
    patches = jax.lax.conv_general_dilated_patches(
        x, (kh, kw), (stride, stride), "VALID",
        dimension_numbers=("NHWC", "HWIO", "NHWC"))          # (n, oh, ow, kh*kw*c) bf16
    m = n * oh * ow
    k = kh * kw * c
    g = next(gg for gg in PACK_FACTORS if m % gg == 0)
    wmat = wpack[g]
    bias = bpack[g]
    cout = wmat.shape[1] // g
    cols = patches.reshape(m // g, g * k)                     # free row-major view
    y = pallas_linear(cols, wmat, bias, relu=True)            # (m//g, g*cout) bf16
    return y.reshape(n, oh, ow, cout)


# ----------------------------------------------------------------------------
# Parameters
# ----------------------------------------------------------------------------
def conv2d_size_out(size, kernel_size, stride):
    return (size - (kernel_size - 1) - 1) // stride + 1


def init_qnetwork_params(key, input_shape, action_dim, hidden_dim):
    """Canonical (PyTorch-layout, f32) QNetwork parameters."""
    c_in, h_in, w_in = input_shape

    def uni(k, shape, fan_in):
        bound = 1.0 / jnp.sqrt(jnp.float32(fan_in))
        return jax.random.uniform(k, shape, jnp.float32, -bound, bound)

    convh = conv2d_size_out(conv2d_size_out(conv2d_size_out(h_in, 8, 4), 4, 2), 3, 1)
    convw = conv2d_size_out(conv2d_size_out(conv2d_size_out(w_in, 8, 4), 4, 2), 3, 1)
    feature_size = convw * convh * 64
    fc_in = feature_size + action_dim

    keys = iter(jax.random.split(key, 32))
    p = {}
    chans_in = c_in
    for name, ksz, _stride, cout in CONV_CFG:
        fan = chans_in * ksz * ksz
        p[name + "_w"] = uni(next(keys), (cout, chans_in, ksz, ksz), fan)
        p[name + "_b"] = uni(next(keys), (cout,), fan)
        chans_in = cout
    for head in ("q1", "q2"):
        p[head + "_fc1_w"] = uni(next(keys), (hidden_dim, fc_in), fc_in)
        p[head + "_fc1_b"] = uni(next(keys), (hidden_dim,), fc_in)
        p[head + "_fc2_w"] = uni(next(keys), (hidden_dim, hidden_dim), hidden_dim)
        p[head + "_fc2_b"] = uni(next(keys), (hidden_dim,), hidden_dim)
        p[head + "_out_w"] = uni(next(keys), (1, hidden_dim), hidden_dim)
        p[head + "_out_b"] = uni(next(keys), (1,), hidden_dim)
    return p, feature_size


def prepare_kernel_params(params, input_shape):
    """Derive the kernel-layout parameter set from canonical torch-layout params.

    Conv weights -> patch-ordered bf16 matmul matrices with g-packed block-diagonal
    variants; Q heads -> one fused bf16 chain (concat / block-diag), with fc1's
    feature rows permuted to NHWC-flatten order.  All done once, outside the jit.
    """
    c_in, h_in, w_in = input_shape
    kp = {}
    chans_in = c_in
    oh, ow = h_in, w_in
    for name, ksz, stride, cout in CONV_CFG:
        oh = conv2d_size_out(oh, ksz, stride)
        ow = conv2d_size_out(ow, ksz, stride)
        w_oihw = params[name + "_w"]
        b = params[name + "_b"].astype(jnp.float32).reshape(1, cout)
        perm = _patch_feature_perm(ksz, ksz, chans_in)
        w_flat = jnp.transpose(w_oihw, (2, 3, 1, 0)).reshape(ksz * ksz * chans_in, cout)
        wmat = w_flat[perm].astype(COMPUTE_DTYPE)
        kp[name + "_w"] = {g: _block_replicate(wmat, g) for g in PACK_FACTORS}
        kp[name + "_b"] = {g: jnp.tile(b, (1, g)) for g in PACK_FACTORS}
        chans_in = cout
    feature_size = oh * ow * chans_in

    w1 = jnp.concatenate([params["q1_fc1_w"].T, params["q2_fc1_w"].T], axis=1)   # (K, 2H)
    w1 = _nchw_rows_to_nhwc(w1, chans_in, oh, ow, feature_size)
    kp["q_w1"] = w1.astype(COMPUTE_DTYPE)
    kp["q_b1"] = jnp.concatenate([params["q1_fc1_b"], params["q2_fc1_b"]])[None, :].astype(jnp.float32)
    kp["q_w2"] = _block_diag2(params["q1_fc2_w"].T, params["q2_fc2_w"].T).astype(COMPUTE_DTYPE)
    kp["q_b2"] = jnp.concatenate([params["q1_fc2_b"], params["q2_fc2_b"]])[None, :].astype(jnp.float32)
    kp["q_w3"] = _block_diag2(params["q1_out_w"].T, params["q2_out_w"].T).astype(COMPUTE_DTYPE)
    kp["q_b3"] = jnp.concatenate([params["q1_out_b"], params["q2_out_b"]])[None, :].astype(jnp.float32)
    return kp


# ----------------------------------------------------------------------------
# Forward passes
# ----------------------------------------------------------------------------
def qnetwork_forward(kparams, state, action):
    """state: (N, C, H, W) f32 (torch convention); action: (N, action_dim) f32."""
    x = jnp.transpose(state.astype(COMPUTE_DTYPE), (0, 2, 3, 1))     # NCHW -> NHWC once
    for name, ksz, stride, _cout in CONV_CFG:
        x = conv2d_relu_nhwc(x, kparams[name + "_w"], kparams[name + "_b"], ksz, ksz, stride)
    n = x.shape[0]
    feats = x.reshape(n, -1)                       # NHWC flatten; q_w1 rows pre-permuted to match
    x1 = jnp.concatenate([feats, action.astype(COMPUTE_DTYPE)], axis=1)
    q = pallas_twin_qhead(x1, kparams["q_w1"], kparams["q_b1"],
                          kparams["q_w2"], kparams["q_b2"],
                          kparams["q_w3"], kparams["q_b3"])          # (n, 2) f32
    return q[:, 0:1], q[:, 1:2]


def qnetwork_forward_ref(params, state, action):
    """Pure-JAX reference on canonical torch-layout params using real convolutions
    (independently validates the patch-order / permutation / packing bookkeeping),
    with the same bf16-input / f32-accumulate precision policy as the kernels."""
    x = state.astype(COMPUTE_DTYPE)                                   # NCHW
    for name, ksz, stride, _cout in CONV_CFG:
        w = params[name + "_w"].astype(COMPUTE_DTYPE)
        y = jax.lax.conv_general_dilated(
            x, w, (stride, stride), "VALID",
            dimension_numbers=("NCHW", "OIHW", "NCHW"),
            preferred_element_type=jnp.float32)
        y = jnp.maximum(y + params[name + "_b"][None, :, None, None], 0.0)
        x = y.astype(COMPUTE_DTYPE)
    n = x.shape[0]
    feats = x.reshape(n, -1)                                          # torch NCHW flatten
    x1 = jnp.concatenate([feats, action.astype(COMPUTE_DTYPE)], axis=1)
    qs = []
    for head in ("q1", "q2"):
        z = x1
        for lyr, act in (("fc1", True), ("fc2", True), ("out", False)):
            wt = params[f"{head}_{lyr}_w"].astype(COMPUTE_DTYPE)
            y = jnp.dot(z, wt.T, preferred_element_type=jnp.float32) + params[f"{head}_{lyr}_b"]
            z = jnp.maximum(y, 0.0).astype(COMPUTE_DTYPE) if act else y
        qs.append(z)
    return qs[0], qs[1]


if __name__ == "__main__":
    # Smallest valid spatial size for this conv stack is 36x36 (-> 8 -> 3 -> 1).
    input_shape = (4, 36, 36)   # (C, H, W)
    action_dim = 6
    hidden_dim = 32

    key = jax.random.PRNGKey(0)
    params, feature_size = init_qnetwork_params(key, input_shape, action_dim, hidden_dim)
    kparams = prepare_kernel_params(params, input_shape)
    assert kparams["q_w1"].shape[0] == feature_size + action_dim

    fwd = jax.jit(qnetwork_forward)
    ref = jax.jit(qnetwork_forward_ref)

    ok = True
    # batch=2 exercises the lane-packed (g>1) conv path; batch=9 exercises the
    # g=1 fallback (odd row count) plus ragged / padded row tiles.
    for batch in (2, 9):
        sk, ak = jax.random.split(jax.random.fold_in(key, batch))
        state = jax.random.normal(sk, (batch,) + input_shape, dtype=jnp.float32)
        action = jax.random.normal(ak, (batch, action_dim), dtype=jnp.float32)

        q1, q2 = fwd(kparams, state, action)
        jax.block_until_ready((q1, q2))
        r1, r2 = ref(params, state, action)

        assert q1.shape == (batch, 1) and q2.shape == (batch, 1)
        assert bool(jnp.all(jnp.isfinite(q1))) and bool(jnp.all(jnp.isfinite(q2)))
        ok &= bool(jnp.allclose(q1, r1, rtol=2e-2, atol=2e-2))
        ok &= bool(jnp.allclose(q2, r2, rtol=2e-2, atol=2e-2))

    assert ok, "Pallas forward does not match pure-JAX reference"
    print("KERNEL_OK")
</pallas_src>

<mosaic_0001>
module attributes {stable_mosaic.version = 11 : i64} {
  func.func @_matmul_bias_kernel(%arg0: i32, %arg1: memref<16x1024xbf16, #tpu.memory_space<vmem>>, %arg2: memref<1024x128xbf16, #tpu.memory_space<vmem>>, %arg3: memref<1x128xf32, #tpu.memory_space<vmem>>, %arg4: memref<16x128xbf16, #tpu.memory_space<vmem>>) attributes {dimension_semantics = [#tpu.dimension_semantics<parallel>], iteration_bounds = array<i64: 2>, scalar_prefetch = 0 : i64, scratch_operands = 0 : i64, tpu.core_type = #tpu.core_type<tc>, window_params = [{transform_indices = @transform_0, window_bounds = array<i64: 16, 1024>}, {pipeline_mode = #tpu.pipeline_mode<synchronous>, transform_indices = @transform_1, window_bounds = array<i64: 1024, 128>}, {pipeline_mode = #tpu.pipeline_mode<synchronous>, transform_indices = @transform_2, window_bounds = array<i64: 1, 128>}, {transform_indices = @transform_3, window_bounds = array<i64: 16, 128>}]} {
    %c0 = arith.constant 0 : index
    %c0_0 = arith.constant 0 : index
    %0 = vector.load %arg1[%c0, %c0_0] : memref<16x1024xbf16, #tpu.memory_space<vmem>>, vector<16x1024xbf16>
    %c0_1 = arith.constant 0 : index
    %c0_2 = arith.constant 0 : index
    %1 = vector.load %arg2[%c0_1, %c0_2] : memref<1024x128xbf16, #tpu.memory_space<vmem>>, vector<1024x128xbf16>
    %cst = arith.constant dense<0.000000e+00> : vector<16x128xf32>
    %2 = tpu.matmul %0, %1, %cst {dimension_numbers = #tpu.dot_dimension_numbers<[1], [0], [0], [1], [0, 0, 1, 1], [], []>} : vector<16x1024xbf16>, vector<1024x128xbf16>, vector<16x128xf32> -> vector<16x128xf32>
    %c0_3 = arith.constant 0 : index
    %c0_4 = arith.constant 0 : index
    %3 = vector.load %arg3[%c0_3, %c0_4] : memref<1x128xf32, #tpu.memory_space<vmem>>, vector<1x128xf32>
    %4 = vector.broadcast %3 : vector<1x128xf32> to vector<16x128xf32>
    %5 = arith.addf %2, %4 : vector<16x128xf32>
    %cst_5 = arith.constant 0.000000e+00 : f32
    %6 = vector.broadcast %cst_5 : f32 to vector<16x128xf32>
    %7 = arith.maximumf %5, %6 : vector<16x128xf32>
    %8 = arith.truncf %7 : vector<16x128xf32> to vector<16x128xbf16>
    %c0_6 = arith.constant 0 : index
    %c0_7 = arith.constant 0 : index
    %9 = vector.load %arg4[%c0_6, %c0_7] : memref<16x128xbf16, #tpu.memory_space<vmem>>, vector<16x128xbf16>
    tpu.vector_store %arg4[%c0_6, %c0_7], %8 {strides = array<i32>} : memref<16x128xbf16, #tpu.memory_space<vmem>>, vector<16x128xbf16>,
    return
  }
  func.func @transform_0(%arg0: i32) -> (i32, i32) {
    %c0_i32 = arith.constant 0 : i32
    %c0_i32_0 = arith.constant 0 : i32
    return %arg0, %c0_i32 : i32, i32
  }
  func.func @transform_1(%arg0: i32) -> (i32, i32) {
    %c0_i32 = arith.constant 0 : i32
    %c0_i32_0 = arith.constant 0 : i32
    %c0_i32_1 = arith.constant 0 : i32
    return %c0_i32, %c0_i32_0 : i32, i32
  }
  func.func @transform_2(%arg0: i32) -> (i32, i32) {
    %c0_i32 = arith.constant 0 : i32
    %c0_i32_0 = arith.constant 0 : i32
    %c0_i32_1 = arith.constant 0 : i32
    return %c0_i32, %c0_i32_0 : i32, i32
  }
  func.func @transform_3(%arg0: i32) -> (i32, i32) {
    %c0_i32 = arith.constant 0 : i32
    %c0_i32_0 = arith.constant 0 : i32
    return %arg0, %c0_i32 : i32, i32
  }
}

module attributes {stable_mosaic.version = 11 : i64} {
  func.func @_matmul_bias_kernel(%arg0: i32, %arg1: memref<8x1024xbf16, #tpu.memory_space<vmem>>, %arg2: memref<1024x128xbf16, #tpu.memory_space<vmem>>, %arg3: memref<1x128xf32, #tpu.memory_space<vmem>>, %arg4: memref<8x128xbf16, #tpu.memory_space<vmem>>) attributes {dimension_semantics = [#tpu.dimension_semantics<parallel>], iteration_bounds = array<i64: 2>, scalar_prefetch = 0 : i64, scratch_operands = 0 : i64, tpu.core_type = #tpu.core_type<tc>, window_params = [{transform_indices = @transform_0, window_bounds = array<i64: 8, 1024>}, {pipeline_mode = #tpu.pipeline_mode<synchronous>, transform_indices = @transform_1, window_bounds = array<i64: 1024, 128>}, {pipeline_mode = #tpu.pipeline_mode<synchronous>, transform_indices = @transform_2, window_bounds = array<i64: 1, 128>}, {transform_indices = @transform_3, window_bounds = array<i64: 8, 128>}]} {
    %c0 = arith.constant 0 : index
    %c0_0 = arith.constant 0 : index
    %0 = vector.load %arg1[%c0, %c0_0] : memref<8x1024xbf16, #tpu.memory_space<vmem>>, vector<8x1024xbf16>
    %c0_1 = arith.constant 0 : index
    %c0_2 = arith.constant 0 : index
    %1 = vector.load %arg2[%c0_1, %c0_2] : memref<1024x128xbf16, #tpu.memory_space<vmem>>, vector<1024x128xbf16>
    %cst = arith.constant dense<0.000000e+00> : vector<8x128xf32>
    %2 = tpu.matmul %0, %1, %cst {dimension_numbers = #tpu.dot_dimension_numbers<[1], [0], [0], [1], [0, 0, 1, 1], [], []>} : vector<8x1024xbf16>, vector<1024x128xbf16>, vector<8x128xf32> -> vector<8x128xf32>
    %c0_3 = arith.constant 0 : index
    %c0_4 = arith.constant 0 : index
    %3 = vector.load %arg3[%c0_3, %c0_4] : memref<1x128xf32, #tpu.memory_space<vmem>>, vector<1x128xf32>
    %4 = vector.broadcast %3 : vector<1x128xf32> to vector<8x128xf32>
    %5 = arith.addf %2, %4 : vector<8x128xf32>
    %cst_5 = arith.constant 0.000000e+00 : f32
    %6 = vector.broadcast %cst_5 : f32 to vector<8x128xf32>
    %7 = arith.maximumf %5, %6 : vector<8x128xf32>
    %8 = arith.truncf %7 : vector<8x128xf32> to vector<8x128xbf16>
    %c0_6 = arith.constant 0 : index
    %c0_7 = arith.constant 0 : index
    %9 = vector.load %arg4[%c0_6, %c0_7] : memref<8x128xbf16, #tpu.memory_space<vmem>>, vector<8x128xbf16>
    tpu.vector_store %arg4[%c0_6, %c0_7], %8 {strides = array<i32>} : memref<8x128xbf16, #tpu.memory_space<vmem>>, vector<8x128xbf16>,
    return
  }
  func.func @transform_0(%arg0: i32) -> (i32, i32) {
    %c0_i32 = arith.constant 0 : i32
    %c0_i32_0 = arith.constant 0 : i32
    return %arg0, %c0_i32 : i32, i32
  }
  func.func @transform_1(%arg0: i32) -> (i32, i32) {
    %c0_i32 = arith.constant 0 : i32
    %c0_i32_0 = arith.constant 0 : i32
    %c0_i32_1 = arith.constant 0 : i32
    return %c0_i32, %c0_i32_0 : i32, i32
  }
  func.func @transform_2(%arg0: i32) -> (i32, i32) {
    %c0_i32 = arith.constant 0 : i32
    %c0_i32_0 = arith.constant 0 : i32
    %c0_i32_1 = arith.constant 0 : i32
    return %c0_i32, %c0_i32_0 : i32, i32
  }
  func.func @transform_3(%arg0: i32) -> (i32, i32) {
    %c0_i32 = arith.constant 0 : i32
    %c0_i32_0 = arith.constant 0 : i32
    return %arg0, %c0_i32 : i32, i32
  }
}

module attributes {stable_mosaic.version = 11 : i64} {
  func.func @_matmul_bias_kernel(%arg0: i32, %arg1: memref<1x1152xbf16, #tpu.memory_space<vmem>>, %arg2: memref<1152x128xbf16, #tpu.memory_space<vmem>>, %arg3: memref<1x128xf32, #tpu.memory_space<vmem>>, %arg4: memref<1x128xbf16, #tpu.memory_space<vmem>>) attributes {dimension_semantics = [#tpu.dimension_semantics<parallel>], iteration_bounds = array<i64: 1>, scalar_prefetch = 0 : i64, scratch_operands = 0 : i64, tpu.core_type = #tpu.core_type<tc>, window_params = [{transform_indices = @transform_0, window_bounds = array<i64: 1, 1152>}, {pipeline_mode = #tpu.pipeline_mode<synchronous>, transform_indices = @transform_1, window_bounds = array<i64: 1152, 128>}, {pipeline_mode = #tpu.pipeline_mode<synchronous>, transform_indices = @transform_2, window_bounds = array<i64: 1, 128>}, {transform_indices = @transform_3, window_bounds = array<i64: 1, 128>}]} {
    %c0 = arith.constant 0 : index
    %c0_0 = arith.constant 0 : index
    %0 = vector.load %arg1[%c0, %c0_0] : memref<1x1152xbf16, #tpu.memory_space<vmem>>, vector<1x1152xbf16>
    %c0_1 = arith.constant 0 : index
    %c0_2 = arith.constant 0 : index
    %1 = vector.load %arg2[%c0_1, %c0_2] : memref<1152x128xbf16, #tpu.memory_space<vmem>>, vector<1152x128xbf16>
    %cst = arith.constant dense<0.000000e+00> : vector<1x128xf32>
    %2 = tpu.matmul %0, %1, %cst {dimension_numbers = #tpu.dot_dimension_numbers<[1], [0], [0], [1], [0, 0, 1, 1], [], []>} : vector<1x1152xbf16>, vector<1152x128xbf16>, vector<1x128xf32> -> vector<1x128xf32>
    %c0_3 = arith.constant 0 : index
    %c0_4 = arith.constant 0 : index
    %3 = vector.load %arg3[%c0_3, %c0_4] : memref<1x128xf32, #tpu.memory_space<vmem>>, vector<1x128xf32>
    %4 = arith.addf %2, %3 : vector<1x128xf32>
    %cst_5 = arith.constant 0.000000e+00 : f32
    %5 = vector.broadcast %cst_5 : f32 to vector<1x128xf32>
    %6 = arith.maximumf %4, %5 : vector<1x128xf32>
    %7 = arith.truncf %6 : vector<1x128xf32> to vector<1x128xbf16>
    %c0_6 = arith.constant 0 : index
    %c0_7 = arith.constant 0 : index
    %8 = vector.load %arg4[%c0_6, %c0_7] : memref<1x128xbf16, #tpu.memory_space<vmem>>, vector<1x128xbf16>
    tpu.vector_store %arg4[%c0_6, %c0_7], %7 {strides = array<i32>} : memref<1x128xbf16, #tpu.memory_space<vmem>>, vector<1x128xbf16>,
    return
  }
  func.func @transform_0(%arg0: i32) -> (i32, i32) {
    %c0_i32 = arith.constant 0 : i32
    %c0_i32_0 = arith.constant 0 : i32
    return %arg0, %c0_i32 : i32, i32
  }
  func.func @transform_1(%arg0: i32) -> (i32, i32) {
    %c0_i32 = arith.constant 0 : i32
    %c0_i32_0 = arith.constant 0 : i32
    %c0_i32_1 = arith.constant 0 : i32
    return %c0_i32, %c0_i32_0 : i32, i32
  }
  func.func @transform_2(%arg0: i32) -> (i32, i32) {
    %c0_i32 = arith.constant 0 : i32
    %c0_i32_0 = arith.constant 0 : i32
    %c0_i32_1 = arith.constant 0 : i32
    return %c0_i32, %c0_i32_0 : i32, i32
  }
  func.func @transform_3(%arg0: i32) -> (i32, i32) {
    %c0_i32 = arith.constant 0 : i32
    %c0_i32_0 = arith.constant 0 : i32
    return %arg0, %c0_i32 : i32, i32
  }
}

module attributes {stable_mosaic.version = 11 : i64} {
  func.func @_twin_qhead_kernel(%arg0: i32, %arg1: memref<2x70xbf16, #tpu.memory_space<vmem>>, %arg2: memref<70x64xbf16, #tpu.memory_space<vmem>>, %arg3: memref<1x64xf32, #tpu.memory_space<vmem>>, %arg4: memref<64x64xbf16, #tpu.memory_space<vmem>>, %arg5: memref<1x64xf32, #tpu.memory_space<vmem>>, %arg6: memref<64x2xbf16, #tpu.memory_space<vmem>>, %arg7: memref<1x2xf32, #tpu.memory_space<vmem>>, %arg8: memref<2x2xf32, #tpu.memory_space<vmem>>) attributes {dimension_semantics = [#tpu.dimension_semantics<parallel>], iteration_bounds = array<i64: 1>, scalar_prefetch = 0 : i64, scratch_operands = 0 : i64, tpu.core_type = #tpu.core_type<tc>, window_params = [{transform_indices = @transform_0, window_bounds = array<i64: 2, 70>}, {pipeline_mode = #tpu.pipeline_mode<synchronous>, transform_indices = @transform_1, window_bounds = array<i64: 70, 64>}, {pipeline_mode = #tpu.pipeline_mode<synchronous>, transform_indices = @transform_2, window_bounds = array<i64: 1, 64>}, {pipeline_mode = #tpu.pipeline_mode<synchronous>, transform_indices = @transform_3, window_bounds = array<i64: 64, 64>}, {pipeline_mode = #tpu.pipeline_mode<synchronous>, transform_indices = @transform_4, window_bounds = array<i64: 1, 64>}, {pipeline_mode = #tpu.pipeline_mode<synchronous>, transform_indices = @transform_5, window_bounds = array<i64: 64, 2>}, {pipeline_mode = #tpu.pipeline_mode<synchronous>, transform_indices = @transform_6, window_bounds = array<i64: 1, 2>}, {transform_indices = @transform_7, window_bounds = array<i64: 2, 2>}]} {
    %c0 = arith.constant 0 : index
    %c0_0 = arith.constant 0 : index
    %0 = vector.load %arg2[%c0, %c0_0] : memref<70x64xbf16, #tpu.memory_space<vmem>>, vector<70x64xbf16>
    %c0_1 = arith.constant 0 : index
    %c0_2 = arith.constant 0 : index
    %1 = vector.load %arg1[%c0_1, %c0_2] : memref<2x70xbf16, #tpu.memory_space<vmem>>, vector<2x70xbf16>
    %cst = arith.constant dense<0.000000e+00> : vector<2x64xf32>
    %2 = tpu.matmul %1, %0, %cst {dimension_numbers = #tpu.dot_dimension_numbers<[1], [0], [0], [1], [0, 0, 1, 1], [], []>} : vector<2x70xbf16>, vector<70x64xbf16>, vector<2x64xf32> -> vector<2x64xf32>
    %c0_3 = arith.constant 0 : index
    %c0_4 = arith.constant 0 : index
    %3 = vector.load %arg3[%c0_3, %c0_4] : memref<1x64xf32, #tpu.memory_space<vmem>>, vector<1x64xf32>
    %4 = vector.broadcast %3 : vector<1x64xf32> to vector<2x64xf32>
    %5 = arith.addf %2, %4 : vector<2x64xf32>
    %cst_5 = arith.constant 0.000000e+00 : f32
    %6 = vector.broadcast %cst_5 : f32 to vector<2x64xf32>
    %7 = arith.maximumf %5, %6 : vector<2x64xf32>
    %8 = arith.truncf %7 : vector<2x64xf32> to vector<2x64xbf16>
    %c0_6 = arith.constant 0 : index
    %c0_7 = arith.constant 0 : index
    %9 = vector.load %arg4[%c0_6, %c0_7] : memref<64x64xbf16, #tpu.memory_space<vmem>>, vector<64x64xbf16>
    %cst_8 = arith.constant dense<0.000000e+00> : vector<2x64xf32>
    %10 = tpu.matmul %8, %9, %cst_8 {dimension_numbers = #tpu.dot_dimension_numbers<[1], [0], [0], [1], [0, 0, 1, 1], [], []>} : vector<2x64xbf16>, vector<64x64xbf16>, vector<2x64xf32> -> vector<2x64xf32>
    %c0_9 = arith.constant 0 : index
    %c0_10 = arith.constant 0 : index
    %11 = vector.load %arg5[%c0_9, %c0_10] : memref<1x64xf32, #tpu.memory_space<vmem>>, vector<1x64xf32>
    %12 = vector.broadcast %11 : vector<1x64xf32> to vector<2x64xf32>
    %13 = arith.addf %10, %12 : vector<2x64xf32>
    %cst_11 = arith.constant 0.000000e+00 : f32
    %14 = vector.broadcast %cst_11 : f32 to vector<2x64xf32>
    %15 = arith.maximumf %13, %14 : vector<2x64xf32>
    %16 = arith.truncf %15 : vector<2x64xf32> to vector<2x64xbf16>
    %c0_12 = arith.constant 0 : index
    %c0_13 = arith.constant 0 : index
    %17 = vector.load %arg6[%c0_12, %c0_13] : memref<64x2xbf16, #tpu.memory_space<vmem>>, vector<64x2xbf16>
    %cst_14 = arith.constant dense<0.000000e+00> : vector<2x2xf32>
    %18 = tpu.matmul %16, %17, %cst_14 {dimension_numbers = #tpu.dot_dimension_numbers<[1], [0], [0], [1], [0, 0, 1, 1], [], []>} : vector<2x64xbf16>, vector<64x2xbf16>, vector<2x2xf32> -> vector<2x2xf32>
    %c0_15 = arith.constant 0 : index
    %c0_16 = arith.constant 0 : index
    %19 = vector.load %arg7[%c0_15, %c0_16] : memref<1x2xf32, #tpu.memory_space<vmem>>, vector<1x2xf32>
    %20 = vector.broadcast %19 : vector<1x2xf32> to vector<2x2xf32>
    %21 = arith.addf %18, %20 : vector<2x2xf32>
    %c0_17 = arith.constant 0 : index
    %c0_18 = arith.constant 0 : index
    %22 = vector.load %arg8[%c0_17, %c0_18] : memref<2x2xf32, #tpu.memory_space<vmem>>, vector<2x2xf32>
    tpu.vector_store %arg8[%c0_17, %c0_18], %21 {strides = array<i32>} : memref<2x2xf32, #tpu.memory_space<vmem>>, vector<2x2xf32>,
    return
  }
  func.func @transform_0(%arg0: i32) -> (i32, i32) {
    %c0_i32 = arith.constant 0 : i32
    %c0_i32_0 = arith.constant 0 : i32
    return %arg0, %c0_i32 : i32, i32
  }
  func.func @transform_1(%arg0: i32) -> (i32, i32) {
    %c0_i32 = arith.constant 0 : i32
    %c0_i32_0 = arith.constant 0 : i32
    %c0_i32_1 = arith.constant 0 : i32
    return %c0_i32, %c0_i32_0 : i32, i32
  }
  func.func @transform_2(%arg0: i32) -> (i32, i32) {
    %c0_i32 = arith.constant 0 : i32
    %c0_i32_0 = arith.constant 0 : i32
    %c0_i32_1 = arith.constant 0 : i32
    return %c0_i32, %c0_i32_0 : i32, i32
  }
  func.func @transform_3(%arg0: i32) -> (i32, i32) {
    %c0_i32 = arith.constant 0 : i32
    %c0_i32_0 = arith.constant 0 : i32
    %c0_i32_1 = arith.constant 0 : i32
    return %c0_i32, %c0_i32_0 : i32, i32
  }
  func.func @transform_4(%arg0: i32) -> (i32, i32) {
    %c0_i32 = arith.constant 0 : i32
    %c0_i32_0 = arith.constant 0 : i32
    %c0_i32_1 = arith.constant 0 : i32
    return %c0_i32, %c0_i32_0 : i32, i32
  }
  func.func @transform_5(%arg0: i32) -> (i32, i32) {
    %c0_i32 = arith.constant 0 : i32
    %c0_i32_0 = arith.constant 0 : i32
    %c0_i32_1 = arith.constant 0 : i32
    return %c0_i32, %c0_i32_0 : i32, i32
  }
  func.func @transform_6(%arg0: i32) -> (i32, i32) {
    %c0_i32 = arith.constant 0 : i32
    %c0_i32_0 = arith.constant 0 : i32
    %c0_i32_1 = arith.constant 0 : i32
    return %c0_i32, %c0_i32_0 : i32, i32
  }
  func.func @transform_7(%arg0: i32) -> (i32, i32) {
    %c0_i32 = arith.constant 0 : i32
    %c0_i32_0 = arith.constant 0 : i32
    return %arg0, %c0_i32 : i32, i32
  }
}

</mosaic_0001>

<bundles_post_ra>
// kernel: qnetwork_forward.4
= control target key start
LH: loop header
LB: loop body
LE: loop exit
PB: predicated region body
PF: predicated region fallthrough
CT: control target
= control target key end

     0   :  { %s1330_s12 = smov 0   ;;  %s1564_s0 = inlined_call_operand.vmem [shape: bf16[32,1024], index: 0, kind: input, shape index: {}]   ;;  %s1565_s1 = inlined_call_operand.vmem [shape: bf16[1024,128], index: 1, kind: input, shape index: {}]   ;;  %s1566_s2 = inlined_call_operand.vmem [shape: f32[1,128], index: 2, kind: input, shape index: {}]   ;;  %s1567_s3 = inlined_call_operand.vmem [shape: bf16[32,128], index: 3, kind: output, shape index: {}]  }
   0x1 LB: > { %s915_s13 = sadd.s32 4294967295, %s1308_s12   ;;  %p919_p0 = scmp.ge.s32.totalorder %s1308_s12, 1  ;;  %s1308_s12 = sphi %s1330_s12, %s13_s12  }
   0x2   : > { %p139_p1 = scmp.lt.s32.totalorder %s1308_s12, 3 }
   0x4   : > { %p140_p2 = pnand %p919_p0, %p139_p1 }
   0x5   : > { %s920_s11 = sshll.u32 (!%p140_p2), %s915_s13, 1 }
   0x6   : > { %143 = sbr.rel (%p140_p2) target bundleno = 226 (0xe2), region = 32  ;;  %p165_p3 = scmp.lt.s32.totalorder (!%p140_p2), %s920_s11, 3 }
   0xb   : > { %v1231_v0 = vld [vmem:[%s1565_s1 + $0x38] sm:$0xff]  ;;  %v1230_v4 = vld [vmem:[%s1565_s1 + $0x30] sm:$0xff]  ;;  %v1229_v8 = vld [vmem:[%s1565_s1 + $0x28] sm:$0xff]  ;;  %s1569_s11 = smov (!%p165_p3, %s920_s11), 3 }
   0xc   : > { %v1239_v1 = vld [vmem:[%s1565_s1 + $0x78] sm:$0xff]  ;;  %741 = vmatpush.bf16.msra.mxu0 %v1231_v0  ;;  %v1238_v5 = vld [vmem:[%s1565_s1 + $0x70] sm:$0xff]  ;;  %v1237_v9 = vld [vmem:[%s1565_s1 + $0x68] sm:$0xff]  ;;  %s1215_s10 = sshll.u32 %s1569_s11, 5 }
   0xd   : > { %v1247_v2 = vld [vmem:[%s1565_s1 + $0xb8] sm:$0xff]  ;;  %755 = vmatpush.bf16.msra.mxu1 %v1239_v1  ;;  %v1246_v6 = vld [vmem:[%s1565_s1 + $0xb0] sm:$0xff]  ;;  %v1245_v10 = vld [vmem:[%s1565_s1 + $0xa8] sm:$0xff]  ;;  %s1428_s23 = scalar_lea.vmem %s1564_s0, %s1215_s10 }
   0xe   : > { %v1255_v3 = vld [vmem:[%s1565_s1 + $0xf8] sm:$0xff]  ;;  %769 = vmatpush.bf16.msra.mxu2 %v1247_v2  ;;  %v1254_v7 = vld [vmem:[%s1565_s1 + $0xf0] sm:$0xff]  ;;  %v1253_v11 = vld [vmem:[%s1565_s1 + $0xe8] sm:$0xff] }
   0xf   : > { %783 = vmatpush.bf16.msra.mxu3 %v1255_v3  ;;  %v1228_v12 = vld [vmem:[%s1565_s1 + $0x20] sm:$0xff]  ;;  %v1227_v16 = vld [vmem:[%s1565_s1 + $0x18] sm:$0xff]  ;;  %v1226_v20 = vld [vmem:[%s1565_s1 + $0x10] sm:$0xff] }
  0x10   : > { %742 = vmatpush.bf16.msra.mxu0 %v1230_v4  ;;  %v1236_v13 = vld [vmem:[%s1565_s1 + $0x60] sm:$0xff]  ;;  %v1235_v17 = vld [vmem:[%s1565_s1 + $0x58] sm:$0xff]  ;;  %v1234_v21 = vld [vmem:[%s1565_s1 + $0x50] sm:$0xff] }
  0x11   : > { %756 = vmatpush.bf16.msra.mxu1 %v1238_v5  ;;  %v1244_v14 = vld [vmem:[%s1565_s1 + $0xa0] sm:$0xff]  ;;  %v1243_v18 = vld [vmem:[%s1565_s1 + $0x98] sm:$0xff]  ;;  %v1242_v22 = vld [vmem:[%s1565_s1 + $0x90] sm:$0xff] }
  0x12   : > { %770 = vmatpush.bf16.msra.mxu2 %v1246_v6  ;;  %v1252_v15 = vld [vmem:[%s1565_s1 + $0xe0] sm:$0xff]  ;;  %v1251_v19 = vld [vmem:[%s1565_s1 + $0xd8] sm:$0xff]  ;;  %v1250_v23 = vld [vmem:[%s1565_s1 + $0xd0] sm:$0xff] }
  0x13   : > { %784 = vmatpush.bf16.msra.mxu3 %v1254_v7  ;;  %v1225_v24 = vld [vmem:[%s1565_s1 + $0x8] sm:$0xff]  ;;  %v1224_v28 = vld [vmem:[%s1565_s1] sm:$0xff]  ;;  %v1263_v32 = vld [vmem:[%s1565_s1 + $0x138] sm:$0xff] }
  0x14   : > { %743 = vmatpush.bf16.msra.mxu0 %v1229_v8  ;;  %v1233_v25 = vld [vmem:[%s1565_s1 + $0x48] sm:$0xff]  ;;  %v1232_v29 = vld [vmem:[%s1565_s1 + $0x40] sm:$0xff]  ;;  %v1271_v33 = vld [vmem:[%s1565_s1 + $0x178] sm:$0xff] }
  0x15   : > { %757 = vmatpush.bf16.msra.mxu1 %v1237_v9  ;;  %v1241_v26 = vld [vmem:[%s1565_s1 + $0x88] sm:$0xff]  ;;  %v1240_v30 = vld [vmem:[%s1565_s1 + $0x80] sm:$0xff]  ;;  %v1279_v42 = vld [vmem:[%s1565_s1 + $0x1b8] sm:$0xff] }
  0x16   : > { %771 = vmatpush.bf16.msra.mxu2 %v1245_v10  ;;  %v1249_v27 = vld [vmem:[%s1565_s1 + $0xc8] sm:$0xff]  ;;  %v1248_v31 = vld [vmem:[%s1565_s1 + $0xc0] sm:$0xff]  ;;  %v1287_v43 = vld [vmem:[%s1565_s1 + $0x1f8] sm:$0xff] }
  0x17   : > { %785 = vmatpush.bf16.msra.mxu3 %v1253_v11  ;;  %v935_v34 = vld [vmem:[%s1428_s23 + $0x8] sm:$0xf]  ;;  %v927_v36 = vld [vmem:[%s1428_s23] sm:$0xf]  ;;  %v1217_v38 = vld [vmem:[%s1428_s23 + $0xc] sm:$0xf] }
  0x18   : > { %744 = vmatpush.bf16.msra.mxu0 %v1228_v12  ;;  %v1221_v35 = vld [vmem:[%s1428_s23 + $0x24] sm:$0xf0]  ;;  %v1220_v37 = vld [vmem:[%s1428_s23 + $0x1c] sm:$0xf0]  ;;  %v937_v39 = vld [vmem:[%s1428_s23 + $0x28] sm:$0xf0] }
  0x19   : > { %758 = vmatpush.bf16.msra.mxu1 %v1236_v13  ;;  %v1216_v40 = vld [vmem:[%s1428_s23 + $0x4] sm:$0xf]  ;;  %v936_v44 = vor.u32 %v1221_v35, %v935_v34  ;;  %v928_v45 = vor.u32 %v1220_v37, %v927_v36  ;;  %v940_v46 = vor.u32 %v1217_v38, %v937_v39  ;;  %v1262_v48 = vld [vmem:[%s1565_s1 + $0x130] sm:$0xff]  ;;  %v1261_v52 = vld [vmem:[%s1565_s1 + $0x128] sm:$0xff] }
  0x1a   : > { %772 = vmatpush.bf16.msra.mxu2 %v1244_v14  ;;  %v929_v41 = vld [vmem:[%s1428_s23 + $0x20] sm:$0xf0]  ;;  %v1270_v49 = vld [vmem:[%s1565_s1 + $0x170] sm:$0xff]  ;;  %v1269_v53 = vld [vmem:[%s1565_s1 + $0x168] sm:$0xff] }
  0x1b   : > { %786 = vmatpush.bf16.msra.mxu3 %v1252_v15  ;;  %v932_v47 = vor.u32 %v1216_v40, %v929_v41  ;;  %v1278_v50 = vld [vmem:[%s1565_s1 + $0x1b0] sm:$0xff]  ;;  %v1277_v54 = vld [vmem:[%s1565_s1 + $0x1a8] sm:$0xff]  ;;  %v1260_v56 = vld [vmem:[%s1565_s1 + $0x120] sm:$0xff] }
  0x1c   : > { %745 = vmatpush.bf16.msra.mxu0 %v1227_v16  ;;  %v1286_v51 = vld [vmem:[%s1565_s1 + $0x1f0] sm:$0xff]  ;;  %v1285_v55 = vld [vmem:[%s1565_s1 + $0x1e8] sm:$0xff]  ;;  %v1268_v57 = vld [vmem:[%s1565_s1 + $0x160] sm:$0xff] }
  0x1d   : > { %759 = vmatpush.bf16.msra.mxu1 %v1235_v17  ;;  %v1276_v58 = vld [vmem:[%s1565_s1 + $0x1a0] sm:$0xff]  ;;  %v1259_v60 = vld [vmem:[%s1565_s1 + $0x118] sm:$0xff]  ;;  %v1258_v0 = vld [vmem:[%s1565_s1 + $0x110] sm:$0xff] }
  0x1e   : > { %773 = vmatpush.bf16.msra.mxu2 %v1243_v18  ;;  %v1284_v59 = vld [vmem:[%s1565_s1 + $0x1e0] sm:$0xff]  ;;  %v1267_v61 = vld [vmem:[%s1565_s1 + $0x158] sm:$0xff]  ;;  %v1266_v1 = vld [vmem:[%s1565_s1 + $0x150] sm:$0xff] }
  0x1f   : > { %787 = vmatpush.bf16.msra.mxu3 %v1251_v19  ;;  %v1275_v62 = vld [vmem:[%s1565_s1 + $0x198] sm:$0xff]  ;;  %v1274_v2 = vld [vmem:[%s1565_s1 + $0x190] sm:$0xff]  ;;  %v1257_v4 = vld [vmem:[%s1565_s1 + $0x108] sm:$0xff] }
  0x20   : > { %746 = vmatpush.bf16.msra.mxu0 %v1226_v20  ;;  %v1283_v63 = vld [vmem:[%s1565_s1 + $0x1d8] sm:$0xff]  ;;  %v1282_v3 = vld [vmem:[%s1565_s1 + $0x1d0] sm:$0xff]  ;;  %v1265_v5 = vld [vmem:[%s1565_s1 + $0x148] sm:$0xff] }
  0x21   : > { %760 = vmatpush.bf16.msra.mxu1 %v1234_v21  ;;  %v1273_v6 = vld [vmem:[%s1565_s1 + $0x188] sm:$0xff]  ;;  %v1256_v8 = vld [vmem:[%s1565_s1 + $0x100] sm:$0xff]  ;;  %v943_v12 = vld [vmem:[%s1428_s23 + $0x10] sm:$0xf] }
  0x22   : > { %774 = vmatpush.bf16.msra.mxu2 %v1242_v22  ;;  %v1281_v7 = vld [vmem:[%s1565_s1 + $0x1c8] sm:$0xff]  ;;  %v1264_v9 = vld [vmem:[%s1565_s1 + $0x140] sm:$0xff]  ;;  %v1222_v13 = vld [vmem:[%s1428_s23 + $0x2c] sm:$0xf0] }
  0x23   : > { %788 = vmatpush.bf16.msra.mxu3 %v1250_v23  ;;  %v1272_v10 = vld [vmem:[%s1565_s1 + $0x180] sm:$0xff]  ;;  %v1218_v14 = vld [vmem:[%s1428_s23 + $0x14] sm:$0xf]  ;;  %v951_v16 = vld [vmem:[%s1428_s23 + $0x18] sm:$0xf]  ;;  %v944_v20 = vor.u32 %v1222_v13, %v943_v12 }
  0x24   : > { %747 = vmatpush.bf16.msra.mxu0 %v1225_v24  ;;  %v1280_v11 = vld [vmem:[%s1565_s1 + $0x1c0] sm:$0xff]  ;;  %v945_v15 = vld [vmem:[%s1428_s23 + $0x30] sm:$0xf0]  ;;  %v1223_v17 = vld [vmem:[%s1428_s23 + $0x34] sm:$0xf0] }
  0x25   : > { %761 = vmatpush.bf16.msra.mxu1 %v1233_v25  ;;  %v1219_v18 = vld [vmem:[%s1428_s23 + $0x1c] sm:$0xf]  ;;  %v948_v21 = vor.u32 %v1218_v14, %v945_v15  ;;  %v952_v22 = vor.u32 %v1223_v17, %v951_v16 }
  0x26   : > { %775 = vmatpush.bf16.msra.mxu2 %v1241_v26  ;;  %v953_v19 = vld [vmem:[%s1428_s23 + $0x38] sm:$0xf0]  ;;  %v1301_v26 = vld [vmem:[%s1566_s2] ss:$0 sm:$0xff]  ;;  %s924_s23 = sshll.u32 %s1569_s11, 2 }
  0x27   : > { %789 = vmatpush.bf16.msra.mxu3 %v1249_v27  ;;  %v956_v23 = vor.u32 %v1219_v18, %v953_v19  ;;  %s175_s28 = scalar_lea.vmem %s1567_s3, %s924_s23 }
  0x28   : > { %748 = vmatpush.bf16.msra.mxu0 %v1224_v28 }
  0x29   : > { %762 = vmatpush.bf16.msra.mxu1 %v1232_v29 }
  0x2a   : > { %776 = vmatpush.bf16.msra.mxu2 %v1240_v30 }
  0x2b   : > { %790 = vmatpush.bf16.msra.mxu3 %v1248_v31  ;;  %749 = vmatmul.bf16.vlgmr.msra.gmra.mxu0 %v928_v45 }
  0x2c   : > { %797 = vmatpush.bf16.msrb.mxu0 %v1263_v32  ;;  %763 = vmatmul.bf16.vlgmr.msra.gmra.mxu1 %v932_v47 }
  0x2d   : > { %811 = vmatpush.bf16.msrb.mxu1 %v1271_v33  ;;  %777 = vmatmul.bf16.vlgmr.msra.gmra.mxu2 %v936_v44 }
  0x2e   : > { %825 = vmatpush.bf16.msrb.mxu2 %v1279_v42  ;;  %791 = vmatmul.bf16.vlgmr.msra.gmra.mxu3 %v940_v46 }
  0x2f   : > { %839 = vmatpush.bf16.msrb.mxu3 %v1287_v43 }
  0x30   : > { %798 = vmatpush.bf16.msrb.mxu0 %v1262_v48 }
  0x31   : > { %812 = vmatpush.bf16.msrb.mxu1 %v1270_v49 }
  0x32   : > { %826 = vmatpush.bf16.msrb.mxu2 %v1278_v50 }
  0x33   : > { %840 = vmatpush.bf16.msrb.mxu3 %v1286_v51 }
  0x34   : > { %799 = vmatpush.bf16.msrb.mxu0 %v1261_v52 }
  0x35   : > { %813 = vmatpush.bf16.msrb.mxu1 %v1269_v53 }
  0x36   : > { %827 = vmatpush.bf16.msrb.mxu2 %v1277_v54 }
  0x37   : > { %841 = vmatpush.bf16.msrb.mxu3 %v1285_v55 }
  0x38   : > { %800 = vmatpush.bf16.msrb.mxu0 %v1260_v56 }
  0x39   : > { %814 = vmatpush.bf16.msrb.mxu1 %v1268_v57 }
  0x3a   : > { %828 = vmatpush.bf16.msrb.mxu2 %v1276_v58 }
  0x3b   : > { %842 = vmatpush.bf16.msrb.mxu3 %v1284_v59 }
  0x3c   : > { %801 = vmatpush.bf16.msrb.mxu0 %v1259_v60 }
  0x3d   : > { %815 = vmatpush.bf16.msrb.mxu1 %v1267_v61 }
  0x3e   : > { %829 = vmatpush.bf16.msrb.mxu2 %v1275_v62 }
  0x3f   : > { %843 = vmatpush.bf16.msrb.mxu3 %v1283_v63 }
  0x40   : > { %802 = vmatpush.bf16.msrb.mxu0 %v1258_v0 }
  0x41   : > { %816 = vmatpush.bf16.msrb.mxu1 %v1266_v1 }
  0x42   : > { %830 = vmatpush.bf16.msrb.mxu2 %v1274_v2 }
  0x43   : > { %844 = vmatpush.bf16.msrb.mxu3 %v1282_v3 }
  0x44   : > { %803 = vmatpush.bf16.msrb.mxu0 %v1257_v4 }
  0x45   : > { %817 = vmatpush.bf16.msrb.mxu1 %v1265_v5 }
  0x46   : > { %831 = vmatpush.bf16.msrb.mxu2 %v1273_v6 }
  0x47   : > { %845 = vmatpush.bf16.msrb.mxu3 %v1281_v7 }
  0x48   : > { %804 = vmatpush.bf16.msrb.mxu0 %v1256_v8 }
  0x49   : > { %818 = vmatpush.bf16.msrb.mxu1 %v1264_v9 }
  0x4a   : > { %832 = vmatpush.bf16.msrb.mxu2 %v1272_v10 }
  0x4b   : > { %846 = vmatpush.bf16.msrb.mxu3 %v1280_v11  ;;  %805 = vmatmul.bf16.vlgmr.msrb.gmra.mxu0 %v944_v20 }
  0x4c   : > { %819 = vmatmul.bf16.vlgmr.msrb.gmra.mxu1 %v948_v21 }
  0x4d   : > { %833 = vmatmul.bf16.vlgmr.msrb.gmra.mxu2 %v952_v22 }
  0x4e   : > { %847 = vmatmul.bf16.vlgmr.msrb.gmra.mxu3 %v956_v23 }
  0xa8   : > { %v750_v24 = vpop.f32.mrf.mxu0 }
  0xa9   : > { %v764_v25 = vpop.f32.mrf.mxu1  ;;  %v751_v29 = vadd.f32 %v1301_v26, %v750_v24 }
  0xab   : > { %v765_v32 = vadd.f32 %v764_v25, %v751_v29 }
  0xb0   : > { %v778_v27 = vpop.f32.mrf.mxu2  ;;  %v752_v30 = vpop.f32.mrf.mxu0 }
  0xb1   : > { %v792_v28 = vpop.f32.mrf.mxu3  ;;  %v766_v31 = vpop.f32.mrf.mxu1  ;;  %v753_v33 = vadd.f32 %v1301_v26, %v752_v30  ;;  %v779_v36 = vadd.f32 %v778_v27, %v765_v32 }
  0xb3   : > { %v767_v37 = vadd.f32 %v766_v31, %v753_v33  ;;  %v793_v40 = vadd.f32 %v792_v28, %v779_v36 }
  0xb8   : > { %v780_v34 = vpop.f32.mrf.mxu2 }
  0xb9   : > { %v794_v35 = vpop.f32.mrf.mxu3  ;;  %v781_v41 = vadd.f32 %v780_v34, %v767_v37 }
  0xbb   : > { %v795_v45 = vadd.f32 %v794_v35, %v781_v41 }
  0xc8   : > { %v806_v38 = vpop.f32.mrf.mxu0 }
  0xc9   : > { %v820_v39 = vpop.f32.mrf.mxu1  ;;  %v807_v42 = vadd.f32 %v806_v38, %v793_v40 }
  0xcb   : > { %v821_v47 = vadd.f32 %v820_v39, %v807_v42 }
  0xd0   : > { %v834_v43 = vpop.f32.mrf.mxu2  ;;  %v808_v46 = vpop.f32.mrf.mxu0 }
  0xd1   : > { %v848_v44 = vpop.f32.mrf.mxu3  ;;  %v809_v48 = vadd.f32 %v808_v46, %v795_v45  ;;  %v835_v49 = vadd.f32 %v834_v43, %v821_v47  ;;  %v822_v50 = vpop.f32.mrf.mxu1 }
  0xd3   : > { %v823_v51 = vadd.f32 %v822_v50, %v809_v48  ;;  %v849_v53 = vadd.f32 %v848_v44, %v835_v49 }
  0xd5   : > { %v853_v57 = vmax.f32 %v849_v53, 0.0 }
  0xd8   : > { %v836_v52 = vpop.f32.mrf.mxu2 }
  0xd9   : > { %v837_v54 = vadd.f32 %v836_v52, %v823_v51  ;;  %v850_v55 = vpop.f32.mrf.mxu3 }
  0xdb   : > { %v851_v56 = vadd.f32 %v850_v55, %v837_v54 }
  0xdd   : > { %v854_v58 = vmax.f32 %v851_v56, 0.0 }
  0xdf   : > { %v1291_v59 = vpack.c.bf16 %v854_v58, %v853_v57 }
  0xe1   : > { %1292 = vst [vmem:[%s175_s28] sm:$0xff] %v1291_v59  }
  0xe2 PF: > { %s13_s12 = sadd.s32 1, %s1308_s12  }
  0xe3   : > { %p10_p4 = scmp.ge.s32.totalorder %s13_s12, 4  }
  0xe5   :  { %12 = sbr.rel (!%p10_p4) target bundleno = 1 (0x1), region = 62 }

// kernel: qnetwork_forward.5
= control target key start
LH: loop header
LB: loop body
LE: loop exit
PB: predicated region body
PF: predicated region fallthrough
CT: control target
= control target key end

     0   :  { %s1245_s12 = smov 0   ;;  %s1471_s0 = inlined_call_operand.vmem [shape: bf16[9,1024], index: 0, kind: input, shape index: {}]   ;;  %s1472_s1 = inlined_call_operand.vmem [shape: bf16[1024,128], index: 1, kind: input, shape index: {}]   ;;  %s1473_s2 = inlined_call_operand.vmem [shape: f32[1,128], index: 2, kind: input, shape index: {}]   ;;  %s1474_s3 = inlined_call_operand.vmem [shape: bf16[9,128], index: 3, kind: output, shape index: {}]  }
   0x1 LB: > { %s877_s13 = sadd.s32 4294967295, %s1223_s12   ;;  %p881_p0 = scmp.ge.s32.totalorder %s1223_s12, 1  ;;  %s1223_s12 = sphi %s1245_s12, %s13_s12  }
   0x2   : > { %p137_p1 = scmp.lt.s32.totalorder %s1223_s12, 3 }
   0x4   : > { %p138_p2 = pnand %p881_p0, %p137_p1 }
   0x5   : > { %p160_p3 = scmp.lt.s32.totalorder (!%p138_p2), %s877_s13, 1 }
   0x6   : > { %141 = sbr.rel (%p138_p2) target bundleno = 218 (0xda), region = 32 }
   0xb   : > { %v1151_v0 = vld [vmem:[%s1472_s1 + $0x38] sm:$0xff]  ;;  %v1150_v4 = vld [vmem:[%s1472_s1 + $0x30] sm:$0xff]  ;;  %v1149_v8 = vld [vmem:[%s1472_s1 + $0x28] sm:$0xff]  ;;  %s1476_s13 = smov (!%p160_p3, %s877_s13), 1 }
   0xc   : > { %v1159_v1 = vld [vmem:[%s1472_s1 + $0x78] sm:$0xff]  ;;  %717 = vmatpush.bf16.msra.mxu0 %v1151_v0  ;;  %v1158_v5 = vld [vmem:[%s1472_s1 + $0x70] sm:$0xff]  ;;  %v1157_v9 = vld [vmem:[%s1472_s1 + $0x68] sm:$0xff]  ;;  %s1143_s29 = sshll.u32 %s1476_s13, 5  ;;  %s884_s25 = sshll.u32 %s1476_s13, 2 }
   0xd   : > { %v1167_v2 = vld [vmem:[%s1472_s1 + $0xb8] sm:$0xff]  ;;  %730 = vmatpush.bf16.msra.mxu1 %v1159_v1  ;;  %v1166_v6 = vld [vmem:[%s1472_s1 + $0xb0] sm:$0xff]  ;;  %v1165_v10 = vld [vmem:[%s1472_s1 + $0xa8] sm:$0xff]  ;;  %s1335_s15 = scalar_lea.vmem %s1471_s0, %s1143_s29  ;;  %s168_s28 = scalar_lea.vmem %s1474_s3, %s884_s25 }
   0xe   : > { %v1175_v3 = vld [vmem:[%s1472_s1 + $0xf8] sm:$0xff]  ;;  %743 = vmatpush.bf16.msra.mxu2 %v1167_v2  ;;  %v1174_v7 = vld [vmem:[%s1472_s1 + $0xf0] sm:$0xff]  ;;  %v1173_v11 = vld [vmem:[%s1472_s1 + $0xe8] sm:$0xff] }
   0xf   : > { %756 = vmatpush.bf16.msra.mxu3 %v1175_v3  ;;  %v1148_v12 = vld [vmem:[%s1472_s1 + $0x20] sm:$0xff]  ;;  %v1147_v16 = vld [vmem:[%s1472_s1 + $0x18] sm:$0xff]  ;;  %v1146_v20 = vld [vmem:[%s1472_s1 + $0x10] sm:$0xff] }
  0x10   : > { %718 = vmatpush.bf16.msra.mxu0 %v1150_v4  ;;  %v1156_v13 = vld [vmem:[%s1472_s1 + $0x60] sm:$0xff]  ;;  %v1155_v17 = vld [vmem:[%s1472_s1 + $0x58] sm:$0xff]  ;;  %v1154_v21 = vld [vmem:[%s1472_s1 + $0x50] sm:$0xff] }
  0x11   : > { %731 = vmatpush.bf16.msra.mxu1 %v1158_v5  ;;  %v1164_v14 = vld [vmem:[%s1472_s1 + $0xa0] sm:$0xff]  ;;  %v1163_v18 = vld [vmem:[%s1472_s1 + $0x98] sm:$0xff]  ;;  %v1162_v22 = vld [vmem:[%s1472_s1 + $0x90] sm:$0xff] }
  0x12   : > { %744 = vmatpush.bf16.msra.mxu2 %v1166_v6  ;;  %v1172_v15 = vld [vmem:[%s1472_s1 + $0xe0] sm:$0xff]  ;;  %v1171_v19 = vld [vmem:[%s1472_s1 + $0xd8] sm:$0xff]  ;;  %v1170_v23 = vld [vmem:[%s1472_s1 + $0xd0] sm:$0xff] }
  0x13   : > { %757 = vmatpush.bf16.msra.mxu3 %v1174_v7  ;;  %v1145_v24 = vld [vmem:[%s1472_s1 + $0x8] sm:$0xff]  ;;  %v169_v29 = vld [vmem:[%s1335_s15] sm:$0xff]  ;;  %v1183_v38 = vld [vmem:[%s1472_s1 + $0x138] sm:$0xff] }
  0x14   : > { %719 = vmatpush.bf16.msra.mxu0 %v1149_v8  ;;  %v1153_v25 = vld [vmem:[%s1472_s1 + $0x48] sm:$0xff]  ;;  %v1144_v30 = vld [vmem:[%s1472_s1] sm:$0xff]  ;;  %v309_v36 = vunpack.c.l.b16 %v169_v29  ;;  %v310_v37 = vunpack.c.h.b16 %v169_v29  ;;  %v1191_v39 = vld [vmem:[%s1472_s1 + $0x178] sm:$0xff] }
  0x15   : > { %732 = vmatpush.bf16.msra.mxu1 %v1157_v9  ;;  %v1161_v26 = vld [vmem:[%s1472_s1 + $0x88] sm:$0xff]  ;;  %v1152_v31 = vld [vmem:[%s1472_s1 + $0x40] sm:$0xff]  ;;  %v1199_v40 = vld [vmem:[%s1472_s1 + $0x1b8] sm:$0xff] }
  0x16   : > { %745 = vmatpush.bf16.msra.mxu2 %v1165_v10  ;;  %v1169_v27 = vld [vmem:[%s1472_s1 + $0xc8] sm:$0xff]  ;;  %v1160_v34 = vld [vmem:[%s1472_s1 + $0x80] sm:$0xff]  ;;  %v1207_v41 = vld [vmem:[%s1472_s1 + $0x1f8] sm:$0xff]  ;;  %v317_v44 = vpack.c.b16 %v309_v36, %v309_v36  ;;  %v318_v45 = vpack.c.b16 %v310_v37, %v310_v37 }
  0x17   : > { %758 = vmatpush.bf16.msra.mxu3 %v1173_v11  ;;  %v170_v28 = vld [vmem:[%s1335_s15 + $0x8] sm:$0xff]  ;;  %v1168_v35 = vld [vmem:[%s1472_s1 + $0xc0] sm:$0xff]  ;;  %v1182_v46 = vld [vmem:[%s1472_s1 + $0x130] sm:$0xff] }
  0x18   : > { %720 = vmatpush.bf16.msra.mxu0 %v1148_v12  ;;  %v311_v32 = vunpack.c.l.b16 %v170_v28  ;;  %v312_v33 = vunpack.c.h.b16 %v170_v28  ;;  %v1190_v47 = vld [vmem:[%s1472_s1 + $0x170] sm:$0xff]  ;;  %v1181_v50 = vld [vmem:[%s1472_s1 + $0x128] sm:$0xff]  ;;  %v1180_v54 = vld [vmem:[%s1472_s1 + $0x120] sm:$0xff] }
  0x19   : > { %733 = vmatpush.bf16.msra.mxu1 %v1156_v13  ;;  %v1198_v48 = vld [vmem:[%s1472_s1 + $0x1b0] sm:$0xff]  ;;  %v1189_v51 = vld [vmem:[%s1472_s1 + $0x168] sm:$0xff]  ;;  %v1188_v55 = vld [vmem:[%s1472_s1 + $0x160] sm:$0xff] }
  0x1a   : > { %746 = vmatpush.bf16.msra.mxu2 %v1164_v14  ;;  %v319_v42 = vpack.c.b16 %v311_v32, %v311_v32  ;;  %v320_v43 = vpack.c.b16 %v312_v33, %v312_v33  ;;  %v1206_v49 = vld [vmem:[%s1472_s1 + $0x1f0] sm:$0xff]  ;;  %v1197_v52 = vld [vmem:[%s1472_s1 + $0x1a8] sm:$0xff]  ;;  %v1196_v56 = vld [vmem:[%s1472_s1 + $0x1a0] sm:$0xff] }
  0x1b   : > { %759 = vmatpush.bf16.msra.mxu3 %v1172_v15  ;;  %v1205_v53 = vld [vmem:[%s1472_s1 + $0x1e8] sm:$0xff]  ;;  %v1204_v57 = vld [vmem:[%s1472_s1 + $0x1e0] sm:$0xff]  ;;  %v1179_v58 = vld [vmem:[%s1472_s1 + $0x118] sm:$0xff] }
  0x1c   : > { %721 = vmatpush.bf16.msra.mxu0 %v1147_v16  ;;  %v1187_v59 = vld [vmem:[%s1472_s1 + $0x158] sm:$0xff]  ;;  %v1178_v62 = vld [vmem:[%s1472_s1 + $0x110] sm:$0xff]  ;;  %v1177_v2 = vld [vmem:[%s1472_s1 + $0x108] sm:$0xff] }
  0x1d   : > { %734 = vmatpush.bf16.msra.mxu1 %v1155_v17  ;;  %v1195_v60 = vld [vmem:[%s1472_s1 + $0x198] sm:$0xff]  ;;  %v1186_v63 = vld [vmem:[%s1472_s1 + $0x150] sm:$0xff]  ;;  %v1185_v3 = vld [vmem:[%s1472_s1 + $0x148] sm:$0xff] }
  0x1e   : > { %747 = vmatpush.bf16.msra.mxu2 %v1163_v18  ;;  %v1203_v61 = vld [vmem:[%s1472_s1 + $0x1d8] sm:$0xff]  ;;  %v1194_v0 = vld [vmem:[%s1472_s1 + $0x190] sm:$0xff]  ;;  %v1193_v5 = vld [vmem:[%s1472_s1 + $0x188] sm:$0xff] }
  0x1f   : > { %760 = vmatpush.bf16.msra.mxu3 %v1171_v19  ;;  %v1202_v1 = vld [vmem:[%s1472_s1 + $0x1d0] sm:$0xff]  ;;  %v1201_v6 = vld [vmem:[%s1472_s1 + $0x1c8] sm:$0xff]  ;;  %v172_v7 = vld [vmem:[%s1335_s15 + $0x18] sm:$0xff] }
  0x20   : > { %722 = vmatpush.bf16.msra.mxu0 %v1146_v20  ;;  %v171_v4 = vld [vmem:[%s1335_s15 + $0x10] sm:$0xff]  ;;  %v1176_v10 = vld [vmem:[%s1472_s1 + $0x100] sm:$0xff]  ;;  %v315_v12 = vunpack.c.l.b16 %v172_v7  ;;  %v316_v13 = vunpack.c.h.b16 %v172_v7 }
  0x21   : > { %735 = vmatpush.bf16.msra.mxu1 %v1154_v21  ;;  %v313_v8 = vunpack.c.l.b16 %v171_v4  ;;  %v314_v9 = vunpack.c.h.b16 %v171_v4  ;;  %v1184_v11 = vld [vmem:[%s1472_s1 + $0x140] sm:$0xff] }
  0x22   : > { %748 = vmatpush.bf16.msra.mxu2 %v1162_v22  ;;  %v1192_v14 = vld [vmem:[%s1472_s1 + $0x180] sm:$0xff]  ;;  %v323_v18 = vpack.c.b16 %v315_v12, %v315_v12  ;;  %v324_v19 = vpack.c.b16 %v316_v13, %v316_v13 }
  0x23   : > { %761 = vmatpush.bf16.msra.mxu3 %v1170_v23  ;;  %v1200_v15 = vld [vmem:[%s1472_s1 + $0x1c0] sm:$0xff]  ;;  %v321_v16 = vpack.c.b16 %v313_v8, %v313_v8  ;;  %v322_v17 = vpack.c.b16 %v314_v9, %v314_v9 }
  0x24   : > { %723 = vmatpush.bf16.msra.mxu0 %v1145_v24 }
  0x25   : > { %736 = vmatpush.bf16.msra.mxu1 %v1153_v25 }
  0x26   : > { %749 = vmatpush.bf16.msra.mxu2 %v1161_v26  ;;  %v1216_v26 = vld [vmem:[%s1473_s2] ss:$0 sm:$0xff] }
  0x27   : > { %762 = vmatpush.bf16.msra.mxu3 %v1169_v27 }
  0x28   : > { %724 = vmatpush.bf16.msra.mxu0 %v1144_v30 }
  0x29   : > { %737 = vmatpush.bf16.msra.mxu1 %v1152_v31 }
  0x2a   : > { %750 = vmatpush.bf16.msra.mxu2 %v1160_v34 }
  0x2b   : > { %763 = vmatpush.bf16.msra.mxu3 %v1168_v35  ;;  %725 = vmatmul.bf16.vlgmr.msra.gmra.mxu0 %v317_v44 }
  0x2c   : > { %769 = vmatpush.bf16.msrb.mxu0 %v1183_v38  ;;  %738 = vmatmul.bf16.vlgmr.msra.gmra.mxu1 %v318_v45 }
  0x2d   : > { %782 = vmatpush.bf16.msrb.mxu1 %v1191_v39  ;;  %751 = vmatmul.bf16.vlgmr.msra.gmra.mxu2 %v319_v42 }
  0x2e   : > { %795 = vmatpush.bf16.msrb.mxu2 %v1199_v40  ;;  %764 = vmatmul.bf16.vlgmr.msra.gmra.mxu3 %v320_v43 }
  0x2f   : > { %808 = vmatpush.bf16.msrb.mxu3 %v1207_v41 }
  0x30   : > { %770 = vmatpush.bf16.msrb.mxu0 %v1182_v46 }
  0x31   : > { %783 = vmatpush.bf16.msrb.mxu1 %v1190_v47 }
  0x32   : > { %796 = vmatpush.bf16.msrb.mxu2 %v1198_v48 }
  0x33   : > { %809 = vmatpush.bf16.msrb.mxu3 %v1206_v49 }
  0x34   : > { %771 = vmatpush.bf16.msrb.mxu0 %v1181_v50 }
  0x35   : > { %784 = vmatpush.bf16.msrb.mxu1 %v1189_v51 }
  0x36   : > { %797 = vmatpush.bf16.msrb.mxu2 %v1197_v52 }
  0x37   : > { %810 = vmatpush.bf16.msrb.mxu3 %v1205_v53 }
  0x38   : > { %772 = vmatpush.bf16.msrb.mxu0 %v1180_v54 }
  0x39   : > { %785 = vmatpush.bf16.msrb.mxu1 %v1188_v55 }
  0x3a   : > { %798 = vmatpush.bf16.msrb.mxu2 %v1196_v56 }
  0x3b   : > { %811 = vmatpush.bf16.msrb.mxu3 %v1204_v57 }
  0x3c   : > { %773 = vmatpush.bf16.msrb.mxu0 %v1179_v58 }
  0x3d   : > { %786 = vmatpush.bf16.msrb.mxu1 %v1187_v59 }
  0x3e   : > { %799 = vmatpush.bf16.msrb.mxu2 %v1195_v60 }
  0x3f   : > { %812 = vmatpush.bf16.msrb.mxu3 %v1203_v61 }
  0x40   : > { %774 = vmatpush.bf16.msrb.mxu0 %v1178_v62 }
  0x41   : > { %787 = vmatpush.bf16.msrb.mxu1 %v1186_v63 }
  0x42   : > { %800 = vmatpush.bf16.msrb.mxu2 %v1194_v0 }
  0x43   : > { %813 = vmatpush.bf16.msrb.mxu3 %v1202_v1 }
  0x44   : > { %775 = vmatpush.bf16.msrb.mxu0 %v1177_v2 }
  0x45   : > { %788 = vmatpush.bf16.msrb.mxu1 %v1185_v3 }
  0x46   : > { %801 = vmatpush.bf16.msrb.mxu2 %v1193_v5 }
  0x47   : > { %814 = vmatpush.bf16.msrb.mxu3 %v1201_v6 }
  0x48   : > { %776 = vmatpush.bf16.msrb.mxu0 %v1176_v10 }
  0x49   : > { %789 = vmatpush.bf16.msrb.mxu1 %v1184_v11 }
  0x4a   : > { %802 = vmatpush.bf16.msrb.mxu2 %v1192_v14 }
  0x4b   : > { %815 = vmatpush.bf16.msrb.mxu3 %v1200_v15  ;;  %777 = vmatmul.bf16.vlgmr.msrb.gmra.mxu0 %v321_v16 }
  0x4c   : > { %790 = vmatmul.bf16.vlgmr.msrb.gmra.mxu1 %v322_v17 }
  0x4d   : > { %803 = vmatmul.bf16.vlgmr.msrb.gmra.mxu2 %v323_v18 }
  0x4e   : > { %816 = vmatmul.bf16.vlgmr.msrb.gmra.mxu3 %v324_v19 }
  0xa8   : > { %v726_v20 = vpop.f32.mrf.mxu0 }
  0xa9   : > { %v739_v21 = vpop.f32.mrf.mxu1  ;;  %v727_v29 = vadd.f32 %v1216_v26, %v726_v20 }
  0xab   : > { %v740_v30 = vadd.f32 %v739_v21, %v727_v29 }
  0xb0   : > { %v752_v22 = vpop.f32.mrf.mxu2  ;;  %v728_v24 = vpop.f32.mrf.mxu0 }
  0xb1   : > { %v765_v23 = vpop.f32.mrf.mxu3  ;;  %v741_v25 = vpop.f32.mrf.mxu1  ;;  %v753_v31 = vadd.f32 %v752_v22, %v740_v30 }
  0xb3   : > { %v766_v32 = vadd.f32 %v765_v23, %v753_v31 }
  0xb8   : > { %v754_v27 = vpop.f32.mrf.mxu2 }
  0xb9   : > { %v767_v28 = vpop.f32.mrf.mxu3 }
  0xc8   : > { %v778_v33 = vpop.f32.mrf.mxu0 }
  0xc9   : > { %v791_v34 = vpop.f32.mrf.mxu1  ;;  %v779_v35 = vadd.f32 %v778_v33, %v766_v32 }
  0xcb   : > { %v792_v36 = vadd.f32 %v791_v34, %v779_v35 }
  0xd0   : > { %v804_v37 = vpop.f32.mrf.mxu2  ;;  %v780_v40 = vpop.f32.mrf.mxu0 }
  0xd1   : > { %v817_v38 = vpop.f32.mrf.mxu3  ;;  %v805_v39 = vadd.f32 %v804_v37, %v792_v36  ;;  %v793_v41 = vpop.f32.mrf.mxu1 }
  0xd3   : > { %v818_v42 = vadd.f32 %v817_v38, %v805_v39 }
  0xd5   : > { %v821_v43 = vmax.f32 %v818_v42, 0.0 }
  0xd7   : > { %v822_v44 = vpack.c.bf16 %v821_v43, %v821_v43 }
  0xd8   : > { %v806_v45 = vpop.f32.mrf.mxu2 }
  0xd9   : > { %v819_v46 = vpop.f32.mrf.mxu3  ;;  %823 = vst [vmem:[%s168_s28] sm:$0xf] %v822_v44 }
  0xda PF: > { %s13_s12 = sadd.s32 1, %s1223_s12  }
  0xdb   : > { %p10_p4 = scmp.ge.s32.totalorder %s13_s12, 4  }
  0xdd   :  { %12 = sbr.rel (!%p10_p4) target bundleno = 1 (0x1), region = 62 }

// kernel: qnetwork_forward.6
= control target key start
LH: loop header
LB: loop body
LE: loop exit
PB: predicated region body
PF: predicated region fallthrough
CT: control target
= control target key end

     0   :  { %vm734_vm0 = vcmask 1040384   ;;  %vm735_vm1 = vsmask.f32 256  ;;  %s1355_s1 = inlined_call_operand.vmem [shape: bf16[1152,128], index: 1, kind: input, shape index: {}]   ;;  %s1356_s0 = inlined_call_operand.vmem [shape: bf16[1,1152], index: 0, kind: input, shape index: {}]   ;;  %s1357_s2 = inlined_call_operand.vmem [shape: f32[1,128], index: 2, kind: input, shape index: {}]   ;;  %s1358_s3 = inlined_call_operand.vmem [shape: bf16[1,128], index: 3, kind: output, shape index: {}]  }
   0x1   :  { %v1039_v0 = vld [vmem:[%s1355_s1 + $0x38] sm:$0xff]  ;;  %v1038_v4 = vld [vmem:[%s1355_s1 + $0x30] sm:$0xff]  ;;  %v1037_v8 = vld [vmem:[%s1355_s1 + $0x28] sm:$0xff] }
   0x2   :  { %v1055_v1 = vld [vmem:[%s1355_s1 + $0xb8] sm:$0xff]  ;;  %615 = vmatpush.bf16.msra.mxu0 %v1039_v0  ;;  %v1054_v5 = vld [vmem:[%s1355_s1 + $0xb0] sm:$0xff]  ;;  %v1053_v9 = vld [vmem:[%s1355_s1 + $0xa8] sm:$0xff] }
   0x3   :  { %v1063_v2 = vld [vmem:[%s1355_s1 + $0xf8] sm:$0xff]  ;;  %641 = vmatpush.bf16.msra.mxu2 %v1055_v1  ;;  %v1062_v6 = vld [vmem:[%s1355_s1 + $0xf0] sm:$0xff]  ;;  %v1061_v10 = vld [vmem:[%s1355_s1 + $0xe8] sm:$0xff] }
   0x4   :  { %v1047_v3 = vld [vmem:[%s1355_s1 + $0x78] sm:$0xff]  ;;  %654 = vmatpush.bf16.msra.mxu3 %v1063_v2  ;;  %v1046_v7 = vld [vmem:[%s1355_s1 + $0x70] sm:$0xff]  ;;  %v1045_v11 = vld [vmem:[%s1355_s1 + $0x68] sm:$0xff] }
   0x5   :  { %628 = vmatpush.bf16.msra.mxu1 %v1047_v3  ;;  %v1036_v12 = vld [vmem:[%s1355_s1 + $0x20] sm:$0xff]  ;;  %v1035_v16 = vld [vmem:[%s1355_s1 + $0x18] sm:$0xff]  ;;  %v1034_v21 = vld [vmem:[%s1355_s1 + $0x10] sm:$0xff] }
   0x6   :  { %616 = vmatpush.bf16.msra.mxu0 %v1038_v4  ;;  %v1052_v13 = vld [vmem:[%s1355_s1 + $0xa0] sm:$0xff]  ;;  %v1051_v17 = vld [vmem:[%s1355_s1 + $0x98] sm:$0xff]  ;;  %v1050_v22 = vld [vmem:[%s1355_s1 + $0x90] sm:$0xff] }
   0x7   :  { %642 = vmatpush.bf16.msra.mxu2 %v1054_v5  ;;  %v1060_v14 = vld [vmem:[%s1355_s1 + $0xe0] sm:$0xff]  ;;  %v1059_v18 = vld [vmem:[%s1355_s1 + $0xd8] sm:$0xff]  ;;  %v1058_v23 = vld [vmem:[%s1355_s1 + $0xd0] sm:$0xff] }
   0x8   :  { %655 = vmatpush.bf16.msra.mxu3 %v1062_v6  ;;  %v1044_v15 = vld [vmem:[%s1355_s1 + $0x60] sm:$0xff]  ;;  %v1043_v19 = vld [vmem:[%s1355_s1 + $0x58] sm:$0xff]  ;;  %v1042_v24 = vld [vmem:[%s1355_s1 + $0x50] sm:$0xff] }
   0x9   :  { %629 = vmatpush.bf16.msra.mxu1 %v1046_v7  ;;  %v14_v20 = vld [vmem:[%s1356_s0] sm:$0xff]  ;;  %v1033_v25 = vld [vmem:[%s1355_s1 + $0x8] sm:$0xff]  ;;  %v1071_v31 = vld [vmem:[%s1355_s1 + $0x138] sm:$0xff] }
   0xa   :  { %617 = vmatpush.bf16.msra.mxu0 %v1037_v8  ;;  %162 = vst [vmem:[#allocation1] ss:$9 sm:$0xff] %v14_v20  ;;  %v1049_v26 = vld [vmem:[%s1355_s1 + $0x88] sm:$0xff]  ;;  %v1032_v29 = vld [vmem:[%s1355_s1] sm:$0xff]  ;;  %v1087_v32 = vld [vmem:[%s1355_s1 + $0x1b8] sm:$0xff] }
   0xb   :  { %643 = vmatpush.bf16.msra.mxu2 %v1053_v9  ;;  %v1057_v27 = vld [vmem:[%s1355_s1 + $0xc8] sm:$0xff]  ;;  %v1048_v30 = vld [vmem:[%s1355_s1 + $0x80] sm:$0xff]  ;;  %v1095_v35 = vld [vmem:[%s1355_s1 + $0x1f8] sm:$0xff] }
   0xc   :  { %656 = vmatpush.bf16.msra.mxu3 %v1061_v10  ;;  %v1041_v28 = vld [vmem:[%s1355_s1 + $0x48] sm:$0xff]  ;;  %v1056_v33 = vld [vmem:[%s1355_s1 + $0xc0] sm:$0xff]  ;;  %v1079_v36 = vld [vmem:[%s1355_s1 + $0x178] sm:$0xff] }
   0xd   :  { %630 = vmatpush.bf16.msra.mxu1 %v1045_v11  ;;  %v1040_v34 = vld [vmem:[%s1355_s1 + $0x40] sm:$0xff]  ;;  %v1070_v37 = vld [vmem:[%s1355_s1 + $0x130] sm:$0xff]  ;;  %v15_v45 = vld [vmem:[%s1356_s0 + $0x8] sm:$0x1] }
   0xe   :  { %618 = vmatpush.bf16.msra.mxu0 %v1036_v12  ;;  %v1086_v38 = vld [vmem:[%s1355_s1 + $0x1b0] sm:$0xff]  ;;  %v1069_v46 = vld [vmem:[%s1355_s1 + $0x128] sm:$0xff]  ;;  %v1068_v54 = vld [vmem:[%s1355_s1 + $0x120] sm:$0xff] }
   0xf   :  { %644 = vmatpush.bf16.msra.mxu2 %v1052_v13  ;;  %v1094_v41 = vld [vmem:[%s1355_s1 + $0x1f0] sm:$0xff]  ;;  %v1085_v47 = vld [vmem:[%s1355_s1 + $0x1a8] sm:$0xff]  ;;  %v1084_v55 = vld [vmem:[%s1355_s1 + $0x1a0] sm:$0xff] }
  0x10   :  { %657 = vmatpush.bf16.msra.mxu3 %v1060_v14  ;;  %v1078_v42 = vld [vmem:[%s1355_s1 + $0x170] sm:$0xff]  ;;  %v1093_v52 = vld [vmem:[%s1355_s1 + $0x1e8] sm:$0xff]  ;;  %v1092_v56 = vld [vmem:[%s1355_s1 + $0x1e0] sm:$0xff] }
  0x11   :  { %631 = vmatpush.bf16.msra.mxu1 %v1044_v15  ;;  %v165_v39 = vld [vmem:[#allocation1 + $0x12] sm:$0xff]  ;;  %v163_v40 = vld [vmem:[#allocation1] sm:$0xff]  ;;  %v164_v44 = vld [vmem:[#allocation1 + $0x9] sm:$0xff] }
  0x12   :  { %619 = vmatpush.bf16.msra.mxu0 %v1035_v16  ;;  %v166_v43 = vld [vmem:[#allocation1 + $0x1b] sm:$0xff]  ;;  %v167_v49 = vld [vmem:[#allocation1 + $0x24] sm:$0xff]  ;;  %v168_v51 = vld [vmem:[#allocation1 + $0x2d] sm:$0xff] }
  0x13   :  { %645 = vmatpush.bf16.msra.mxu2 %v1051_v17  ;;  %v169_v48 = vld [vmem:[#allocation1 + $0x36] sm:$0xff]  ;;  %v170_v50 = vld [vmem:[#allocation1 + $0x3f] sm:$0xff]  ;;  %v1077_v53 = vld [vmem:[%s1355_s1 + $0x168] sm:$0xff] }
  0x14   :  { %658 = vmatpush.bf16.msra.mxu3 %v1059_v18  ;;  %172 = vst [vmem:[#allocation1] ss:$9 sm:$0xff] %v15_v45  ;;  %v1076_v57 = vld [vmem:[%s1355_s1 + $0x160] sm:$0xff]  ;;  %v1067_v58 = vld [vmem:[%s1355_s1 + $0x118] sm:$0xff]  ;;  %v1066_v62 = vld [vmem:[%s1355_s1 + $0x110] sm:$0xff] }
  0x15   :  { %632 = vmatpush.bf16.msra.mxu1 %v1043_v19  ;;  %v1083_v59 = vld [vmem:[%s1355_s1 + $0x198] sm:$0xff]  ;;  %v1082_v63 = vld [vmem:[%s1355_s1 + $0x190] sm:$0xff]  ;;  %v1065_v2 = vld [vmem:[%s1355_s1 + $0x108] sm:$0xff] }
  0x16   :  { %620 = vmatpush.bf16.msra.mxu0 %v1034_v21  ;;  %v1091_v60 = vld [vmem:[%s1355_s1 + $0x1d8] sm:$0xff]  ;;  %v1090_v0 = vld [vmem:[%s1355_s1 + $0x1d0] sm:$0xff]  ;;  %v1081_v3 = vld [vmem:[%s1355_s1 + $0x188] sm:$0xff] }
  0x17   :  { %646 = vmatpush.bf16.msra.mxu2 %v1050_v22  ;;  %v1075_v61 = vld [vmem:[%s1355_s1 + $0x158] sm:$0xff]  ;;  %v1074_v1 = vld [vmem:[%s1355_s1 + $0x150] sm:$0xff]  ;;  %v1089_v4 = vld [vmem:[%s1355_s1 + $0x1c8] sm:$0xff] }
  0x18   :  { %659 = vmatpush.bf16.msra.mxu3 %v1058_v23  ;;  %v1073_v5 = vld [vmem:[%s1355_s1 + $0x148] sm:$0xff]  ;;  %v1064_v6 = vld [vmem:[%s1355_s1 + $0x100] sm:$0xff]  ;;  %v1103_v8 = vld [vmem:[%s1355_s1 + $0x238] sm:$0xff] }
  0x19   :  { %633 = vmatpush.bf16.msra.mxu1 %v1042_v24  ;;  %v1080_v7 = vld [vmem:[%s1355_s1 + $0x180] sm:$0xff]  ;;  %v1102_v11 = vld [vmem:[%s1355_s1 + $0x230] sm:$0xff]  ;;  %v1101_v12 = vld [vmem:[%s1355_s1 + $0x228] sm:$0xff] }
  0x1a   :  { %621 = vmatpush.bf16.msra.mxu0 %v1033_v25  ;;  %v1088_v9 = vld [vmem:[%s1355_s1 + $0x1c0] sm:$0xff]  ;;  %v1099_v14 = vld [vmem:[%s1355_s1 + $0x218] sm:$0xff]  ;;  %v1098_v15 = vld [vmem:[%s1355_s1 + $0x210] sm:$0xff] }
  0x1b   :  { %647 = vmatpush.bf16.msra.mxu2 %v1049_v26  ;;  %v1072_v10 = vld [vmem:[%s1355_s1 + $0x140] sm:$0xff]  ;;  %v1097_v16 = vld [vmem:[%s1355_s1 + $0x208] sm:$0xff]  ;;  %vm736_vm2 = vmand %vm734_vm0, %vm735_vm1 }
  0x1c   :  { %660 = vmatpush.bf16.msra.mxu3 %v1057_v27  ;;  %v1100_v13 = vld [vmem:[%s1355_s1 + $0x220] sm:$0xff] }
  0x1d   :  { %634 = vmatpush.bf16.msra.mxu1 %v1041_v28  ;;  %v1096_v17 = vld [vmem:[%s1355_s1 + $0x200] sm:$0xff] }
  0x1e   :  { %622 = vmatpush.bf16.msra.mxu0 %v1032_v29  ;;  %v173_v18 = vld [vmem:[#allocation1] sm:$0xff] }
  0x1f   :  { %648 = vmatpush.bf16.msra.mxu2 %v1048_v30  ;;  %v160_v27 = vld [vmem:[%s1357_s2] sm:$0x1] }
  0x20   :  { %661 = vmatpush.bf16.msra.mxu3 %v1056_v33 }
  0x21   :  { %635 = vmatpush.bf16.msra.mxu1 %v1040_v34  ;;  %623 = vmatmul.bf16.vlgmr.msra.gmra.mxu0 %v163_v40 }
  0x22   :  { %667 = vmatpush.bf16.msrb.mxu0 %v1071_v31  ;;  %649 = vmatmul.bf16.vlgmr.msra.gmra.mxu2 %v165_v39 }
  0x23   :  { %693 = vmatpush.bf16.msrb.mxu2 %v1087_v32  ;;  %662 = vmatmul.bf16.vlgmr.msra.gmra.mxu3 %v166_v43 }
  0x24   :  { %706 = vmatpush.bf16.msrb.mxu3 %v1095_v35  ;;  %636 = vmatmul.bf16.vlgmr.msra.gmra.mxu1 %v164_v44 }
  0x25   :  { %680 = vmatpush.bf16.msrb.mxu1 %v1079_v36 }
  0x26   :  { %668 = vmatpush.bf16.msrb.mxu0 %v1070_v37 }
  0x27   :  { %694 = vmatpush.bf16.msrb.mxu2 %v1086_v38 }
  0x28   :  { %707 = vmatpush.bf16.msrb.mxu3 %v1094_v41 }
  0x29   :  { %681 = vmatpush.bf16.msrb.mxu1 %v1078_v42 }
  0x2a   :  { %669 = vmatpush.bf16.msrb.mxu0 %v1069_v46 }
  0x2b   :  { %695 = vmatpush.bf16.msrb.mxu2 %v1085_v47  ;;  %v737_v47 = vld [vmem:[%s1358_s3] sm:$0x1] }
  0x2c   :  { %708 = vmatpush.bf16.msrb.mxu3 %v1093_v52 }
  0x2d   :  { %682 = vmatpush.bf16.msrb.mxu1 %v1077_v53 }
  0x2e   :  { %670 = vmatpush.bf16.msrb.mxu0 %v1068_v54 }
  0x2f   :  { %696 = vmatpush.bf16.msrb.mxu2 %v1084_v55 }
  0x30   :  { %709 = vmatpush.bf16.msrb.mxu3 %v1092_v56 }
  0x31   :  { %683 = vmatpush.bf16.msrb.mxu1 %v1076_v57 }
  0x32   :  { %671 = vmatpush.bf16.msrb.mxu0 %v1067_v58 }
  0x33   :  { %697 = vmatpush.bf16.msrb.mxu2 %v1083_v59 }
  0x34   :  { %710 = vmatpush.bf16.msrb.mxu3 %v1091_v60 }
  0x35   :  { %684 = vmatpush.bf16.msrb.mxu1 %v1075_v61 }
  0x36   :  { %672 = vmatpush.bf16.msrb.mxu0 %v1066_v62 }
  0x37   :  { %698 = vmatpush.bf16.msrb.mxu2 %v1082_v63 }
  0x38   :  { %711 = vmatpush.bf16.msrb.mxu3 %v1090_v0 }
  0x39   :  { %685 = vmatpush.bf16.msrb.mxu1 %v1074_v1 }
  0x3a   :  { %673 = vmatpush.bf16.msrb.mxu0 %v1065_v2 }
  0x3b   :  { %699 = vmatpush.bf16.msrb.mxu2 %v1081_v3 }
  0x3c   :  { %712 = vmatpush.bf16.msrb.mxu3 %v1089_v4 }
  0x3d   :  { %686 = vmatpush.bf16.msrb.mxu1 %v1073_v5 }
  0x3e   :  { %674 = vmatpush.bf16.msrb.mxu0 %v1064_v6 }
  0x3f   :  { %700 = vmatpush.bf16.msrb.mxu2 %v1080_v7 }
  0x40   :  { %713 = vmatpush.bf16.msrb.mxu3 %v1088_v9 }
  0x41   :  { %687 = vmatpush.bf16.msrb.mxu1 %v1072_v10  ;;  %675 = vmatmul.bf16.vlgmr.msrb.gmra.mxu0 %v167_v49 }
  0x42   :  { %719 = vmatpush.bf16.msra.mxu0 %v1103_v8  ;;  %701 = vmatmul.bf16.vlgmr.msrb.gmra.mxu2 %v169_v48 }
  0x43   :  { %714 = vmatmul.bf16.vlgmr.msrb.gmra.mxu3 %v170_v50 }
  0x44   :  { %688 = vmatmul.bf16.vlgmr.msrb.gmra.mxu1 %v168_v51 }
  0x46   :  { %720 = vmatpush.bf16.msra.mxu0 %v1102_v11 }
  0x4a   :  { %721 = vmatpush.bf16.msra.mxu0 %v1101_v12 }
  0x4e   :  { %722 = vmatpush.bf16.msra.mxu0 %v1100_v13 }
  0x52   :  { %723 = vmatpush.bf16.msra.mxu0 %v1099_v14 }
  0x56   :  { %724 = vmatpush.bf16.msra.mxu0 %v1098_v15 }
  0x5a   :  { %725 = vmatpush.bf16.msra.mxu0 %v1097_v16 }
  0x5e   :  { %726 = vmatpush.bf16.msra.mxu0 %v1096_v17 }
  0x61   :  { %727 = vmatmul.bf16.vlgmr.msra.gmra.mxu0 %v173_v18 }
  0x9e   :  { %v624_v19 = vpop.f32.mrf.mxu0 }
  0x9f   :  { %v625_v28 = vadd.f32 %v624_v19, %v160_v27 }
  0xa1   :  { %v637_v20 = vpop.f32.mrf.mxu1 }
  0xa2   :  { %v638_v31 = vadd.f32 %v637_v20, %v625_v28 }
  0xa5   :  { %v650_v21 = vpop.f32.mrf.mxu2 }
  0xa6   :  { %v663_v22 = vpop.f32.mrf.mxu3  ;;  %v626_v23 = vpop.f32.mrf.mxu0  ;;  %v651_v33 = vadd.f32 %v650_v21, %v638_v31 }
  0xa8   :  { %v664_v37 = vadd.f32 %v663_v22, %v651_v33 }
  0xa9   :  { %v639_v24 = vpop.f32.mrf.mxu1 }
  0xad   :  { %v652_v25 = vpop.f32.mrf.mxu2 }
  0xae   :  { %v665_v26 = vpop.f32.mrf.mxu3 }
  0xbe   :  { %v676_v29 = vpop.f32.mrf.mxu0 }
  0xbf   :  { %v677_v39 = vadd.f32 %v676_v29, %v664_v37 }
  0xc1   :  { %v689_v30 = vpop.f32.mrf.mxu1 }
  0xc2   :  { %v690_v41 = vadd.f32 %v689_v30, %v677_v39 }
  0xc5   :  { %v702_v32 = vpop.f32.mrf.mxu2 }
  0xc6   :  { %v715_v34 = vpop.f32.mrf.mxu3  ;;  %v678_v35 = vpop.f32.mrf.mxu0  ;;  %v703_v42 = vadd.f32 %v702_v32, %v690_v41 }
  0xc8   :  { %v716_v43 = vadd.f32 %v715_v34, %v703_v42 }
  0xc9   :  { %v691_v36 = vpop.f32.mrf.mxu1 }
  0xcd   :  { %v704_v38 = vpop.f32.mrf.mxu2 }
  0xce   :  { %v717_v40 = vpop.f32.mrf.mxu3 }
  0xde   :  { %v728_v44 = vpop.f32.mrf.mxu0 }
  0xdf   :  { %v729_v45 = vadd.f32 %v728_v44, %v716_v43 }
  0xe1   :  { %v732_v46 = vmax.f32 %v729_v45, 0.0 }
  0xe3   :  { %v733_v48 = vpack.c.bf16 %v732_v46, %v732_v46 }
  0xe5   :  { %v738_v49 = vsel %vm736_vm2, %v733_v48, %v737_v47 }
  0xe6   :  { %739 = vst [vmem:[%s1358_s3] sm:$0x1] %v738_v49  ;;  %v730_v50 = vpop.f32.mrf.mxu0 }

// kernel: qnetwork_forward.7
= control target key start
LH: loop header
LB: loop body
LE: loop exit
PB: predicated region body
PF: predicated region fallthrough
CT: control target
= control target key end

     0   :  { %vm72_vm0 = vcmask 1042432   ;;  %vm68_vm1 = vcmask 572416   ;;  %vm127_vm2 = vcmask 523264   ;;  %vm198_vm3 = vcmask 9216   ;;  %s364_s1 = inlined_call_operand.vmem [shape: bf16[70,64], index: 1, kind: input, shape index: {}]   ;;  %s365_s3 = inlined_call_operand.vmem [shape: bf16[64,64], index: 3, kind: input, shape index: {}]   ;;  %s366_s2 = inlined_call_operand.vmem [shape: f32[1,64], index: 2, kind: input, shape index: {}]   ;;  %s367_s0 = inlined_call_operand.vmem [shape: bf16[2,70], index: 0, kind: input, shape index: {}]   ;;  %s368_s4 = inlined_call_operand.vmem [shape: f32[1,64], index: 4, kind: input, shape index: {}]   ;;  %s369_s5 = inlined_call_operand.vmem [shape: bf16[64,2], index: 5, kind: input, shape index: {}]   ;;  %s370_s6 = inlined_call_operand.vmem [shape: f32[1,2], index: 6, kind: input, shape index: {}]   ;;  %s371_s7 = inlined_call_operand.vmem [shape: f32[2,2], index: 7, kind: output, shape index: {}]  }
   0x1   :  { %v35_v0 = vld [vmem:[%s364_s1 + $0x20] sm:$0x7]  ;;  %v262_v2 = vld [vmem:[%s365_s3 + $0x18] sm:$0xff]  ;;  %v261_v4 = vld [vmem:[%s365_s3 + $0x10] sm:$0xff] }
   0x2   :  { %v58_v1 = vunpack.c.l.b16 %v35_v0  ;;  %135 = vmatpush.bf16.msra.mxu1 %v262_v2  ;;  %v258_v6 = vld [vmem:[%s364_s1 + $0x18] sm:$0xff]  ;;  %v257_v7 = vld [vmem:[%s364_s1 + $0x10] sm:$0xff]  ;;  %v256_v8 = vld [vmem:[%s364_s1 + $0x8] sm:$0xff] }
   0x3   :  { %v255_v9 = vld [vmem:[%s364_s1] sm:$0xff]  ;;  %v260_v11 = vld [vmem:[%s365_s3 + $0x8] sm:$0xff]  ;;  %v266_v13 = vld [vmem:[%s369_s5 + $0x18] sm:$0xff] }
   0x4   :  { %v63_v3 = vpack.c.b16 %v58_v1, %v58_v1  ;;  %v36_v10 = vld [vmem:[%s367_s0] sm:$0x1]  ;;  %189 = vmatpush.bf16.msra.mxu2 %v266_v13  ;;  %v265_v14 = vld [vmem:[%s369_s5 + $0x10] sm:$0xff]  ;;  %v264_v21 = vld [vmem:[%s369_s5 + $0x8] sm:$0xff] }
   0x5   :  { %v259_v12 = vld [vmem:[%s365_s3] sm:$0xff] }
   0x6   :  { %v74_v5 = vsel %vm72_vm0, %v63_v3, 0  ;;  %136 = vmatpush.bf16.msra.mxu1 %v261_v4  ;;  %v267_v15 = vld [vmem:[%s366_s2] ss:$0 sm:$0xff] }
   0x7   :  { %79 = vmatpush.bf16.msra.mxu0 %v74_v5  ;;  %v263_v22 = vld [vmem:[%s369_s5] sm:$0xff] }
   0x8   :  { %190 = vmatpush.bf16.msra.mxu2 %v265_v14  ;;  %v268_v23 = vld [vmem:[%s368_s4] ss:$0 sm:$0xff] }
   0x9   :  { %v269_v29 = vld [vmem:[%s370_s6] ss:$0 sm:$0xff] }
   0xa   :  { %137 = vmatpush.bf16.msra.mxu1 %v260_v11 }
   0xb   :  { %80 = vmatpush.bf16.msra.mxu0 %v258_v6 }
   0xc   :  { %191 = vmatpush.bf16.msra.mxu2 %v264_v21 }
   0xe   :  { %138 = vmatpush.bf16.msra.mxu1 %v259_v12 }
   0xf   :  { %81 = vmatpush.bf16.msra.mxu0 %v257_v7 }
  0x10   :  { %192 = vmatpush.bf16.msra.mxu2 %v263_v22 }
  0x13   :  { %82 = vmatpush.bf16.msra.mxu0 %v256_v8 }
  0x17   :  { %83 = vmatpush.bf16.msra.mxu0 %v255_v9 }
  0x1a   :  { %220 = vmatmul.msk.bf16.vlgmr.msra.gmra.mxu0 %vm68_vm1, %v36_v10 }
  0x97   :  { %v85_v16 = vpop.f32.mrf.mxu0 }
  0x98   :  { %v86_v17 = vadd.f32 %v267_v15, %v85_v16 }
  0x9a   :  { %v89_v18 = vmax.f32 %v86_v17, 0.0 }
  0x9c   :  { %v90_v19 = vpack.c.bf16 %v89_v18, %v89_v18 }
  0x9e   :  { %237 = vmatmul.msk.bf16.vlgmr.msra.gmra.mxu1 %vm127_vm2, %v90_v19 }
  0x9f   :  { %v87_v20 = vpop.f32.mrf.mxu0 }
 0x11b   :  { %v140_v24 = vpop.f32.mrf.mxu1 }
 0x11c   :  { %v141_v25 = vadd.f32 %v268_v23, %v140_v24 }
 0x11e   :  { %v144_v26 = vmax.f32 %v141_v25, 0.0 }
 0x120   :  { %v145_v27 = vpack.c.bf16 %v144_v26, %v144_v26 }
 0x122   :  { %254 = vmatmul.msk.bf16.vlgmr.msra.gmra.mxu2 %vm127_vm2, %v145_v27 }
 0x123   :  { %v142_v28 = vpop.f32.mrf.mxu1 }
 0x1a5   :  { %v194_v30 = vpop.f32.mrf.mxu2 }
 0x1a6   :  { %v195_v31 = vadd.f32 %v269_v29, %v194_v30 }
 0x1a8   :  { %199 = vst.msk [vmem:[%s371_s7] sm:$0x3] %vm198_vm3, %v195_v31 }
 0x1ad   :  { %v196_v32 = vpop.f32.mrf.mxu2 }

</bundles_post_ra>
